<compile_context>
chip_gen: v7x
topology: tpu7x:2x2x1
jax: 0.10.0
libtpu: 0.0.40
codegen_flags: <defaults>
</compile_context>

<pallas_src>
import jax
import jax.numpy as jnp
from jax.experimental import pallas as pl
from jax.experimental.pallas import tpu as pltpu

LANES = 128


def fqf_forward_kernel(x_ref, w1_ref, b1_ref, w2_ref, b2_ref,
                       wp_ref, bp_ref, we_ref, be_ref, wf_ref, bf_ref,
                       out_ref):
    cdt = w1_ref.dtype  # MXU operand dtype (bf16 by default; f32 accumulate)

    # ---- encoder: 2-layer MLP + ReLU (bf16 MXU operands, f32 accumulate) ----
    x = x_ref[...].astype(cdt)                                         # [TB, D]
    h = jnp.dot(x, w1_ref[...], preferred_element_type=jnp.float32) + b1_ref[...]
    h = jnp.maximum(h, 0.0)
    h = jnp.dot(h.astype(cdt), w2_ref[...],
                preferred_element_type=jnp.float32) + b2_ref[...]
    h = jnp.maximum(h, 0.0)                                            # [TB, F] f32

    # ---- proposal -> softmax probs (f32; divide folded to EUP reciprocal) ---
    logits = (jnp.dot(h.astype(cdt), wp_ref[...],
                      preferred_element_type=jnp.float32) + bp_ref[...])  # [TB, N]
    z = logits - jnp.max(logits, axis=1, keepdims=True)
    ez = jnp.exp(z)
    # approx=False: probs must sum to ~1 for the quantile-weight fold below.
    inv_den = pl.reciprocal(jnp.sum(ez, axis=1, keepdims=True), approx=False)
    probs = ez * inv_den                                               # [TB, N]

    # ---- inclusive cumsum via in-kernel triangular mask (all f32, exact) ----
    # taus_minus = taus - probs ; taus_prime = (taus + taus_minus)/2
    tb, n_q = probs.shape
    row = jax.lax.broadcasted_iota(jnp.int32, (n_q, n_q), 0)
    col = jax.lax.broadcasted_iota(jnp.int32, (n_q, n_q), 1)
    tri = (row <= col).astype(jnp.float32)                             # [N, N]
    taus = jnp.dot(probs, tri, preferred_element_type=jnp.float32)     # [TB, N]
    taus_prime = taus - 0.5 * probs                                    # [TB, N]

    # ---- IQN cos feature, flattened into one MXU-shaped matmul --------------
    # cos arguments stay f32 (up to ~pi*E); only the cos output is cast.
    # NOTE: keep production n_quantiles a multiple of 8 so this reshape stays
    # layout-free (no materialized copy).
    e_sz, f_sz = we_ref.shape
    steps = (jax.lax.broadcasted_iota(jnp.int32, (1, 1, e_sz), 2) + 1
             ).astype(jnp.float32)
    prior = jnp.cos(jnp.pi * steps * taus_prime[:, :, None])           # [TB, N, E]
    prior2d = prior.reshape(tb * n_q, e_sz).astype(cdt)                # [TB*N, E]
    phi = jnp.dot(prior2d, we_ref[...],
                  preferred_element_type=jnp.float32) + be_ref[...]
    phi = jnp.maximum(phi, 0.0).reshape(tb, n_q, f_sz)                 # [TB, N, F]

    # ---- fold quantile-weighted sum into the final (lane-padded) FC ---------
    # out = sum_n probs[:,n] * ((h*phi[:,n,:]) @ wf + bf)
    #     = (h * sum_n probs[:,n]*phi[:,n,:]) @ wf + bf     (sum_n probs == 1)
    wphi = jnp.sum(probs[:, :, None] * phi, axis=1)                    # [TB, F]
    weighted = (h * wphi).astype(cdt)                                  # [TB, F]
    out_ref[...] = (jnp.dot(weighted, wf_ref[...],
                            preferred_element_type=jnp.float32) + bf_ref[...])


def _resident_spec(shape):
    nd = len(shape)
    return pl.BlockSpec(shape, lambda *_: (0,) * nd)   # constant block index


def _vmem_bytes_estimate(tb, D, H, F, N, E, A_pad, mm_bytes):
    """Rough per-step VMEM budget (weights + double-buffered I/O + f32 temps)."""
    weights = mm_bytes * (D * H + H * F + F * N + E * F + F * A_pad) \
        + 4 * (H + F + N + F + A_pad)
    io = 2 * 4 * tb * (D + A_pad)                      # double-buffered x / out
    temps = 4 * tb * (H + 3 * F + 4 * N + 2 * N * E + 2 * N * F)
    return 2 * (weights + io + temps)                  # 2x headroom


def fqf_forward(x, params, *, block_b=256, matmul_dtype=jnp.bfloat16):
    """Batch-tiled FQF forward.  block_b = max batch rows per grid step."""
    (w1, b1, w2, b2, wp, bp, we, be, wf, bf) = params
    B, D = x.shape
    H = w1.shape[1]
    F = w2.shape[1]
    N = wp.shape[1]
    E = we.shape[0]
    A = wf.shape[1]
    A_pad = -(-A // LANES) * LANES                     # lane-dense output width

    # Batch tile: multiple of 8 sublanes; cap so there are >= 2 grid blocks
    # when the batch allows (keeps both v7x TensorCores busy via "parallel").
    tb = min(block_b, B)
    if B >= 16:
        half = -(-(-(-B // 2)) // 8) * 8               # round_up8(ceil(B/2))
        tb = min(tb, half)
    if tb >= 8:
        tb = (tb // 8) * 8
    tb = max(tb, 1)
    n_blocks = -(-B // tb)
    b_pad = n_blocks * tb
    if b_pad != B:
        # Padded rows give a uniform softmax (no NaN) and are sliced off below.
        x = jnp.pad(x, ((0, b_pad - B), (0, 0)))

    # Lane-dense final layer: zero-pad wf/bf so the padded output columns are
    # exactly zero and slicing [:, :A] reproduces the module output.
    wf_p = jnp.zeros((F, A_pad), wf.dtype).at[:, :A].set(wf)
    bf_p = jnp.zeros((1, A_pad), bf.dtype).at[:, :A].set(bf)

    # MXU operands in bf16 (default); biases / accumulators stay f32.
    w1c, w2c, wpc, wec, wfc = (w.astype(matmul_dtype)
                               for w in (w1, w2, wp, we, wf_p))

    args = (x, w1c, b1, w2c, b2, wpc, bp, wec, be, wfc, bf_p)
    weight_specs = [_resident_spec(a.shape) for a in args[1:]]

    mm_bytes = jnp.dtype(matmul_dtype).itemsize
    weight_bytes = mm_bytes * (D * H + H * F + F * N + E * F + F * A_pad) \
        + 4 * (H + F + N + F + A_pad)
    cost = pl.CostEstimate(
        flops=2 * b_pad * (D * H + H * F + F * N + N * N + N * E * F + F * A_pad),
        transcendentals=b_pad * (N * E + N + 1),
        bytes_accessed=4 * b_pad * (D + A_pad) + weight_bytes,
    )
    vmem_limit = int(min(max(_vmem_bytes_estimate(tb, D, H, F, N, E, A_pad,
                                                  mm_bytes),
                             32 * 1024 * 1024),
                         64 * 1024 * 1024))

    out = pl.pallas_call(
        fqf_forward_kernel,
        out_shape=jax.ShapeDtypeStruct((b_pad, A_pad), jnp.float32),
        grid=(n_blocks,),
        in_specs=[pl.BlockSpec((tb, D), lambda i: (i, 0))] + weight_specs,
        out_specs=pl.BlockSpec((tb, A_pad), lambda i: (i, 0)),
        compiler_params=pltpu.CompilerParams(
            dimension_semantics=("parallel",),
            vmem_limit_bytes=vmem_limit),
        cost_estimate=cost,
    )(*args)
    return out[:B, :A]


def fqf_forward_ref(x, params):
    """Pure-JAX reference mirroring the PyTorch module line-by-line."""
    (w1, b1, w2, b2, wp, bp, we, be, wf, bf) = params
    h = jnp.maximum(x @ w1 + b1, 0.0)
    h = jnp.maximum(h @ w2 + b2, 0.0)
    logits = h @ wp + bp
    log_probs = jax.nn.log_softmax(logits, axis=1)
    probs = jnp.exp(log_probs)
    taus = jnp.cumsum(probs, axis=1)
    pads = jnp.zeros((h.shape[0], 1), jnp.float32)
    taus_minus = jnp.concatenate([pads, taus[:, :-1]], axis=1)
    taus_prime = 0.5 * (taus + taus_minus)
    E = we.shape[0]
    steps = jnp.arange(E, dtype=jnp.float32) + 1.0
    prior = jnp.cos(jnp.pi * steps[None, None, :] * taus_prime[:, :, None])
    phi = jnp.maximum(jnp.einsum('bne,ef->bnf', prior, we) + be, 0.0)
    prod = h[:, None, :] * phi
    q = jnp.einsum('bnf,fa->bna', prod, wf) + bf                    # [B, N, A]
    quantiles = jnp.transpose(q, (0, 2, 1))                         # [B, A, N]
    weight = (taus - taus_minus)[:, None, :]                        # [B, 1, N]
    return jnp.sum(weight * quantiles, axis=2)                      # [B, A]


def _init_linear(key, fan_in, fan_out):
    # PyTorch nn.Linear default: U(-1/sqrt(fan_in), 1/sqrt(fan_in)).
    k_w, k_b = jax.random.split(key)
    bound = 1.0 / jnp.sqrt(jnp.float32(fan_in))
    w = jax.random.uniform(k_w, (fan_in, fan_out), jnp.float32, -bound, bound)
    b = jax.random.uniform(k_b, (1, fan_out), jnp.float32, -bound, bound)
    return w, b


if __name__ == "__main__":
    # Small, module-consistent shapes.
    B = 16         # batch (tiled with block_b=8 -> 2 grid steps)
    D = 32         # observation dim (vector observations)
    H = 64         # encoder hidden
    F = 64         # encoder.get_feature_size()
    N = 8          # n_quantiles (multiple of 8 keeps the [TB*N,E] reshape free)
    E = 64         # embed_size
    A = 4          # action_size (lane-padded to 128 inside the wrapper)

    key = jax.random.PRNGKey(0)
    kx, k1, k2, kp, ke, kf = jax.random.split(key, 6)

    x = jax.random.normal(kx, (B, D), jnp.float32)
    w1, b1 = _init_linear(k1, D, H)      # encoder layer 1
    w2, b2 = _init_linear(k2, H, F)      # encoder layer 2
    wp, bp = _init_linear(kp, F, N)      # _proposal
    we, be = _init_linear(ke, E, F)      # _embed
    wf, bf = _init_linear(kf, F, A)      # _fc
    params = (w1, b1, w2, b2, wp, bp, we, be, wf, bf)

    ref = fqf_forward_ref(x, params)

    # f32 MXU path: validates exact semantics against the module reference.
    out_f32 = jax.block_until_ready(
        fqf_forward(x, params, block_b=8, matmul_dtype=jnp.float32))
    assert out_f32.shape == (B, A)
    assert jnp.allclose(out_f32, ref, rtol=1e-4, atol=1e-4), (out_f32, ref)

    # Production path: bf16 MXU operands (default), lane-dense padded output.
    out_bf16 = jax.block_until_ready(fqf_forward(x, params, block_b=8))
    assert out_bf16.shape == (B, A)
    assert jnp.allclose(out_bf16, ref, rtol=5e-2, atol=5e-2), (out_bf16, ref)

    print("KERNEL_OK")
</pallas_src>

<mosaic_0001>
module attributes {stable_mosaic.version = 11 : i64} {
  func.func @fqf_forward_kernel(%arg0: i32, %arg1: memref<8x32xf32, #tpu.memory_space<vmem>>, %arg2: memref<32x64xf32, #tpu.memory_space<vmem>>, %arg3: memref<1x64xf32, #tpu.memory_space<vmem>>, %arg4: memref<64x64xf32, #tpu.memory_space<vmem>>, %arg5: memref<1x64xf32, #tpu.memory_space<vmem>>, %arg6: memref<64x8xf32, #tpu.memory_space<vmem>>, %arg7: memref<1x8xf32, #tpu.memory_space<vmem>>, %arg8: memref<64x64xf32, #tpu.memory_space<vmem>>, %arg9: memref<1x64xf32, #tpu.memory_space<vmem>>, %arg10: memref<64x128xf32, #tpu.memory_space<vmem>>, %arg11: memref<1x128xf32, #tpu.memory_space<vmem>>, %arg12: memref<8x128xf32, #tpu.memory_space<vmem>>) attributes {dimension_semantics = [#tpu.dimension_semantics<parallel>], iteration_bounds = array<i64: 2>, scalar_prefetch = 0 : i64, scratch_operands = 0 : i64, tpu.core_type = #tpu.core_type<tc>, window_params = [{transform_indices = @transform_0, window_bounds = array<i64: 8, 32>}, {pipeline_mode = #tpu.pipeline_mode<synchronous>, transform_indices = @transform_1, window_bounds = array<i64: 32, 64>}, {pipeline_mode = #tpu.pipeline_mode<synchronous>, transform_indices = @transform_2, window_bounds = array<i64: 1, 64>}, {pipeline_mode = #tpu.pipeline_mode<synchronous>, transform_indices = @transform_3, window_bounds = array<i64: 64, 64>}, {pipeline_mode = #tpu.pipeline_mode<synchronous>, transform_indices = @transform_4, window_bounds = array<i64: 1, 64>}, {pipeline_mode = #tpu.pipeline_mode<synchronous>, transform_indices = @transform_5, window_bounds = array<i64: 64, 8>}, {pipeline_mode = #tpu.pipeline_mode<synchronous>, transform_indices = @transform_6, window_bounds = array<i64: 1, 8>}, {pipeline_mode = #tpu.pipeline_mode<synchronous>, transform_indices = @transform_7, window_bounds = array<i64: 64, 64>}, {pipeline_mode = #tpu.pipeline_mode<synchronous>, transform_indices = @transform_8, window_bounds = array<i64: 1, 64>}, {pipeline_mode = #tpu.pipeline_mode<synchronous>, transform_indices = @transform_9, window_bounds = array<i64: 64, 128>}, {pipeline_mode = #tpu.pipeline_mode<synchronous>, transform_indices = @transform_10, window_bounds = array<i64: 1, 128>}, {transform_indices = @transform_11, window_bounds = array<i64: 8, 128>}]} {
    %c0 = arith.constant 0 : index
    %c0_0 = arith.constant 0 : index
    %0 = vector.load %arg1[%c0, %c0_0] : memref<8x32xf32, #tpu.memory_space<vmem>>, vector<8x32xf32>
    %c0_1 = arith.constant 0 : index
    %c0_2 = arith.constant 0 : index
    %1 = vector.load %arg2[%c0_1, %c0_2] : memref<32x64xf32, #tpu.memory_space<vmem>>, vector<32x64xf32>
    %cst = arith.constant dense<0.000000e+00> : vector<8x64xf32>
    %2 = tpu.matmul %0, %1, %cst {dimension_numbers = #tpu.dot_dimension_numbers<[1], [0], [0], [1], [0, 0, 1, 1], [], []>} : vector<8x32xf32>, vector<32x64xf32>, vector<8x64xf32> -> vector<8x64xf32>
    %c0_3 = arith.constant 0 : index
    %c0_4 = arith.constant 0 : index
    %3 = vector.load %arg3[%c0_3, %c0_4] : memref<1x64xf32, #tpu.memory_space<vmem>>, vector<1x64xf32>
    %4 = vector.broadcast %3 : vector<1x64xf32> to vector<8x64xf32>
    %5 = arith.addf %2, %4 : vector<8x64xf32>
    %cst_5 = arith.constant 0.000000e+00 : f32
    %6 = vector.broadcast %cst_5 : f32 to vector<8x64xf32>
    %7 = arith.maximumf %5, %6 : vector<8x64xf32>
    %c0_6 = arith.constant 0 : index
    %c0_7 = arith.constant 0 : index
    %8 = vector.load %arg4[%c0_6, %c0_7] : memref<64x64xf32, #tpu.memory_space<vmem>>, vector<64x64xf32>
    %cst_8 = arith.constant dense<0.000000e+00> : vector<8x64xf32>
    %9 = tpu.matmul %7, %8, %cst_8 {dimension_numbers = #tpu.dot_dimension_numbers<[1], [0], [0], [1], [0, 0, 1, 1], [], []>} : vector<8x64xf32>, vector<64x64xf32>, vector<8x64xf32> -> vector<8x64xf32>
    %c0_9 = arith.constant 0 : index
    %c0_10 = arith.constant 0 : index
    %10 = vector.load %arg5[%c0_9, %c0_10] : memref<1x64xf32, #tpu.memory_space<vmem>>, vector<1x64xf32>
    %11 = vector.broadcast %10 : vector<1x64xf32> to vector<8x64xf32>
    %12 = arith.addf %9, %11 : vector<8x64xf32>
    %cst_11 = arith.constant 0.000000e+00 : f32
    %13 = vector.broadcast %cst_11 : f32 to vector<8x64xf32>
    %14 = arith.maximumf %12, %13 : vector<8x64xf32>
    %c0_12 = arith.constant 0 : index
    %c0_13 = arith.constant 0 : index
    %15 = vector.load %arg6[%c0_12, %c0_13] : memref<64x8xf32, #tpu.memory_space<vmem>>, vector<64x8xf32>
    %cst_14 = arith.constant dense<0.000000e+00> : vector<8x8xf32>
    %16 = tpu.matmul %14, %15, %cst_14 {dimension_numbers = #tpu.dot_dimension_numbers<[1], [0], [0], [1], [0, 0, 1, 1], [], []>} : vector<8x64xf32>, vector<64x8xf32>, vector<8x8xf32> -> vector<8x8xf32>
    %c0_15 = arith.constant 0 : index
    %c0_16 = arith.constant 0 : index
    %17 = vector.load %arg7[%c0_15, %c0_16] : memref<1x8xf32, #tpu.memory_space<vmem>>, vector<1x8xf32>
    %18 = vector.broadcast %17 : vector<1x8xf32> to vector<8x8xf32>
    %19 = arith.addf %16, %18 : vector<8x8xf32>
    %cst_17 = arith.constant dense<0xFF800000> : vector<8xf32>
    %20 = vector.multi_reduction <maximumf>, %19, %cst_17 [1] : vector<8x8xf32> to vector<8xf32>
    %21 = vector.shape_cast %20 : vector<8xf32> to vector<8x1xf32>
    %22 = vector.broadcast %21 : vector<8x1xf32> to vector<8x8xf32>
    %23 = arith.subf %19, %22 : vector<8x8xf32>
    %24 = math.exp %23 : vector<8x8xf32>
    %cst_18 = arith.constant dense<0.000000e+00> : vector<8xf32>
    %25 = vector.multi_reduction <add>, %24, %cst_18 [1] : vector<8x8xf32> to vector<8xf32>
    %26 = vector.shape_cast %25 : vector<8xf32> to vector<8x1xf32>
    %27 = tpu.reciprocal %26 : vector<8x1xf32> -> vector<8x1xf32>
    %28 = vector.broadcast %27 : vector<8x1xf32> to vector<8x8xf32>
    %29 = arith.mulf %24, %28 : vector<8x8xf32>
    %30 = tpu.iota {dimensions = array<i32: 0>} : vector<8x8xi32>
    %31 = tpu.iota {dimensions = array<i32: 1>} : vector<8x8xi32>
    %32 = arith.cmpi sle, %30, %31 : vector<8x8xi32>
    %33 = arith.extui %32 : vector<8x8xi1> to vector<8x8xi32>
    %34 = arith.sitofp %33 : vector<8x8xi32> to vector<8x8xf32>
    %cst_19 = arith.constant dense<0.000000e+00> : vector<8x8xf32>
    %35 = tpu.matmul %29, %34, %cst_19 {dimension_numbers = #tpu.dot_dimension_numbers<[1], [0], [0], [1], [0, 0, 1, 1], [], []>} : vector<8x8xf32>, vector<8x8xf32>, vector<8x8xf32> -> vector<8x8xf32>
    %cst_20 = arith.constant 5.000000e-01 : f32
    %36 = vector.broadcast %cst_20 : f32 to vector<8x8xf32>
    %37 = arith.mulf %36, %29 : vector<8x8xf32>
    %38 = arith.subf %35, %37 : vector<8x8xf32>
    %39 = tpu.iota {dimensions = array<i32: 2>} : vector<1x1x64xi32>
    %c1_i32 = arith.constant 1 : i32
    %40 = vector.broadcast %c1_i32 : i32 to vector<1x1x64xi32>
    %41 = arith.addi %39, %40 : vector<1x1x64xi32>
    %42 = arith.sitofp %41 : vector<1x1x64xi32> to vector<1x1x64xf32>
    %cst_21 = arith.constant 3.14159274 : f32
    %43 = vector.broadcast %cst_21 : f32 to vector<1x1x64xf32>
    %44 = arith.mulf %43, %42 : vector<1x1x64xf32>
    %45 = vector.shape_cast %38 : vector<8x8xf32> to vector<8x8x1xf32>
    %46 = vector.broadcast %44 : vector<1x1x64xf32> to vector<8x8x64xf32>
    %47 = vector.broadcast %45 : vector<8x8x1xf32> to vector<8x8x64xf32>
    %48 = arith.mulf %46, %47 : vector<8x8x64xf32>
    %49 = math.cos %48 : vector<8x8x64xf32>
    %50 = vector.shape_cast %49 : vector<8x8x64xf32> to vector<64x64xf32>
    %c0_22 = arith.constant 0 : index
    %c0_23 = arith.constant 0 : index
    %51 = vector.load %arg8[%c0_22, %c0_23] : memref<64x64xf32, #tpu.memory_space<vmem>>, vector<64x64xf32>
    %cst_24 = arith.constant dense<0.000000e+00> : vector<64x64xf32>
    %52 = tpu.matmul %50, %51, %cst_24 {dimension_numbers = #tpu.dot_dimension_numbers<[1], [0], [0], [1], [0, 0, 1, 1], [], []>} : vector<64x64xf32>, vector<64x64xf32>, vector<64x64xf32> -> vector<64x64xf32>
    %c0_25 = arith.constant 0 : index
    %c0_26 = arith.constant 0 : index
    %53 = vector.load %arg9[%c0_25, %c0_26] : memref<1x64xf32, #tpu.memory_space<vmem>>, vector<1x64xf32>
    %54 = vector.broadcast %53 : vector<1x64xf32> to vector<64x64xf32>
    %55 = arith.addf %52, %54 : vector<64x64xf32>
    %cst_27 = arith.constant 0.000000e+00 : f32
    %56 = vector.broadcast %cst_27 : f32 to vector<64x64xf32>
    %57 = arith.maximumf %55, %56 : vector<64x64xf32>
    %58 = vector.shape_cast %57 : vector<64x64xf32> to vector<8x8x64xf32>
    %59 = vector.shape_cast %29 : vector<8x8xf32> to vector<8x8x1xf32>
    %60 = vector.broadcast %59 : vector<8x8x1xf32> to vector<8x8x64xf32>
    %61 = arith.mulf %60, %58 : vector<8x8x64xf32>
    %cst_28 = arith.constant dense<0.000000e+00> : vector<8x64xf32>
    %62 = vector.multi_reduction <add>, %61, %cst_28 [1] : vector<8x8x64xf32> to vector<8x64xf32>
    %63 = arith.mulf %14, %62 : vector<8x64xf32>
    %c0_29 = arith.constant 0 : index
    %c0_30 = arith.constant 0 : index
    %64 = vector.load %arg10[%c0_29, %c0_30] : memref<64x128xf32, #tpu.memory_space<vmem>>, vector<64x128xf32>
    %cst_31 = arith.constant dense<0.000000e+00> : vector<8x128xf32>
    %65 = tpu.matmul %63, %64, %cst_31 {dimension_numbers = #tpu.dot_dimension_numbers<[1], [0], [0], [1], [0, 0, 1, 1], [], []>} : vector<8x64xf32>, vector<64x128xf32>, vector<8x128xf32> -> vector<8x128xf32>
    %c0_32 = arith.constant 0 : index
    %c0_33 = arith.constant 0 : index
    %66 = vector.load %arg11[%c0_32, %c0_33] : memref<1x128xf32, #tpu.memory_space<vmem>>, vector<1x128xf32>
    %67 = vector.broadcast %66 : vector<1x128xf32> to vector<8x128xf32>
    %68 = arith.addf %65, %67 : vector<8x128xf32>
    %c0_34 = arith.constant 0 : index
    %c0_35 = arith.constant 0 : index
    %69 = vector.load %arg12[%c0_34, %c0_35] : memref<8x128xf32, #tpu.memory_space<vmem>>, vector<8x128xf32>
    tpu.vector_store %arg12[%c0_34, %c0_35], %68 {strides = array<i32>} : memref<8x128xf32, #tpu.memory_space<vmem>>, vector<8x128xf32>,
    return
  }
  func.func @transform_0(%arg0: i32) -> (i32, i32) {
    %c0_i32 = arith.constant 0 : i32
    %c0_i32_0 = arith.constant 0 : i32
    return %arg0, %c0_i32 : i32, i32
  }
  func.func @transform_1(%arg0: i32) -> (i32, i32) {
    %c0_i32 = arith.constant 0 : i32
    %c0_i32_0 = arith.constant 0 : i32
    %c0_i32_1 = arith.constant 0 : i32
    return %c0_i32, %c0_i32_0 : i32, i32
  }
  func.func @transform_2(%arg0: i32) -> (i32, i32) {
    %c0_i32 = arith.constant 0 : i32
    %c0_i32_0 = arith.constant 0 : i32
    %c0_i32_1 = arith.constant 0 : i32
    return %c0_i32, %c0_i32_0 : i32, i32
  }
  func.func @transform_3(%arg0: i32) -> (i32, i32) {
    %c0_i32 = arith.constant 0 : i32
    %c0_i32_0 = arith.constant 0 : i32
    %c0_i32_1 = arith.constant 0 : i32
    return %c0_i32, %c0_i32_0 : i32, i32
  }
  func.func @transform_4(%arg0: i32) -> (i32, i32) {
    %c0_i32 = arith.constant 0 : i32
    %c0_i32_0 = arith.constant 0 : i32
    %c0_i32_1 = arith.constant 0 : i32
    return %c0_i32, %c0_i32_0 : i32, i32
  }
  func.func @transform_5(%arg0: i32) -> (i32, i32) {
    %c0_i32 = arith.constant 0 : i32
    %c0_i32_0 = arith.constant 0 : i32
    %c0_i32_1 = arith.constant 0 : i32
    return %c0_i32, %c0_i32_0 : i32, i32
  }
  func.func @transform_6(%arg0: i32) -> (i32, i32) {
    %c0_i32 = arith.constant 0 : i32
    %c0_i32_0 = arith.constant 0 : i32
    %c0_i32_1 = arith.constant 0 : i32
    return %c0_i32, %c0_i32_0 : i32, i32
  }
  func.func @transform_7(%arg0: i32) -> (i32, i32) {
    %c0_i32 = arith.constant 0 : i32
    %c0_i32_0 = arith.constant 0 : i32
    %c0_i32_1 = arith.constant 0 : i32
    return %c0_i32, %c0_i32_0 : i32, i32
  }
  func.func @transform_8(%arg0: i32) -> (i32, i32) {
    %c0_i32 = arith.constant 0 : i32
    %c0_i32_0 = arith.constant 0 : i32
    %c0_i32_1 = arith.constant 0 : i32
    return %c0_i32, %c0_i32_0 : i32, i32
  }
  func.func @transform_9(%arg0: i32) -> (i32, i32) {
    %c0_i32 = arith.constant 0 : i32
    %c0_i32_0 = arith.constant 0 : i32
    %c0_i32_1 = arith.constant 0 : i32
    return %c0_i32, %c0_i32_0 : i32, i32
  }
  func.func @transform_10(%arg0: i32) -> (i32, i32) {
    %c0_i32 = arith.constant 0 : i32
    %c0_i32_0 = arith.constant 0 : i32
    %c0_i32_1 = arith.constant 0 : i32
    return %c0_i32, %c0_i32_0 : i32, i32
  }
  func.func @transform_11(%arg0: i32) -> (i32, i32) {
    %c0_i32 = arith.constant 0 : i32
    %c0_i32_0 = arith.constant 0 : i32
    return %arg0, %c0_i32 : i32, i32
  }
}

</mosaic_0001>

<bundles_post_ra>
// kernel: tpu_custom_call.1
= control target key start
LH: loop header
LB: loop body
LE: loop exit
PB: predicated region body
PF: predicated region fallthrough
CT: control target
= control target key end

     0   :  { %s3809_s0 = inlined_call_operand.vmem [shape: f32[16,32], index: 0, kind: input, shape index: {}]   ;;  %s3810_s1 = inlined_call_operand.hbm [shape: f32[32,64], index: 1, kind: input, shape index: {}]   ;;  %s3811_s2 = inlined_call_operand.vmem [shape: f32[1,64], index: 2, kind: input, shape index: {}]   ;;  %s3812_s3 = inlined_call_operand.vmem [shape: f32[64,64], index: 3, kind: input, shape index: {}]   ;;  %s3813_s4 = inlined_call_operand.vmem [shape: f32[1,64], index: 4, kind: input, shape index: {}]   ;;  %s3814_s5 = inlined_call_operand.vmem [shape: f32[64,8], index: 5, kind: input, shape index: {}]   ;;  %s3815_s6 = inlined_call_operand.vmem [shape: f32[1,8], index: 6, kind: input, shape index: {}]   ;;  %s3816_s7 = inlined_call_operand.hbm [shape: f32[64,64], index: 7, kind: input, shape index: {}]   ;;  %s3817_s8 = inlined_call_operand.vmem [shape: f32[1,64], index: 8, kind: input, shape index: {}]   ;;  %s3818_s9 = inlined_call_operand.hbm [shape: f32[64,128], index: 9, kind: input, shape index: {}]   ;;  %s3819_s10 = inlined_call_operand.vmem [shape: f32[1,128], index: 10, kind: input, shape index: {}]   ;;  %s3820_s11 = inlined_call_operand.hbm [shape: f32[16,128], index: 11, kind: output, shape index: {}]  }
   0x1   :  { %3837 = sst [smem:[#allocation18_spill]] %s3820_s11 }
   0x2   :  { %16 = vsyncpa [#allocation3], 0 }
   0x3   :  { %17 = vsyncpa [#allocation6], 0 }
   0x4   :  { %18 = vsyncpa [#allocation4], 0 }
   0x5   :  { %20 = vsyncpa [#allocation4 + $0x1], 0  ;;  %s2824_s17 = smov 0   ;;  %s2826_s18 = smov 0  }
   0x6   :  { %s2828_s19 = smov 0   ;;  %s2830_s20 = smov 0  }
   0x7 LB: > { %3838 = sst [smem:[#allocation12_spill]] %s2734_s17  ;;  %s2845_s21 = sadd.s32 4294967295, %s2746_s20   ;;  %s2746_s20 = sphi %s2830_s20, %s3881_s20   ;;  %s2742_s19 = sphi %s2828_s19, %s3883_s19   ;;  %s2738_s18 = sphi %s2826_s18, %s3885_s18   ;;  %s2734_s17 = sphi %s2824_s17, %s3884_s17  }
   0x8   : > { %3839 = sst [smem:[#allocation13_spill]] %s2742_s19  ;;  %s2165_s22 = sadd.s32 4294967294, %s2746_s20  }
   0x9   : > { %3840 = sst [smem:[#allocation14_spill]] %s2746_s20  ;;  %s2849_s23 = sadd.s32 1, %s2746_s20  }
   0xa   : > { %3841 = sst [smem:[#allocation15_spill]] %s2849_s23  ;;  %s269_s24 = sadd.s32 1, %s2742_s19 }
   0xb   : > { %s266_s25 = ssub.s32 %s2746_s20, %s2849_s23  ;;  %p279_p0 = scmp.ne.s32.totalorder %s2742_s19, %s2738_s18 }
   0xc   : > { %p267_p1 = scmp.eq.s32.totalorder %s266_s25, 0  ;;  %p280_p2 = scmp.eq.s32.totalorder %s2845_s21, 1 }
   0xd   : > { %p285_p3 = scmp.ne.s32.totalorder %s2738_s18, %s2734_s17  ;;  %p286_p4 = scmp.eq.s32.totalorder %s2165_s22, 1 }
   0xe   : > { %s2860_s26 = scalar_select %p267_p1, %s2742_s19, %s269_s24  }
   0xf   : > { %p2862_p5 = por %p280_p2, %p279_p0  ;;  %p2866_p6 = por %p286_p4, %p285_p3 }
  0x10   : > { %3842 = sst [smem:[#allocation16_spill]] %s2860_s26  ;;  %p2166_p7 = scmp.ge.s32.totalorder %s2746_s20, 1 }
  0x11   : > { %s3843_s27 = scalar_select %p2862_p5, 1, 0 }
  0x12   : > { %s3844_s28 = scalar_select %p2866_p6, 1, 0 }
  0x13   : > { %p293_p8 = scmp.lt.s32.totalorder %s2746_s20, 3  ;;  %p3824_p9 = scmp.eq.s32.totalorder %s2845_s21, 0 }
  0x14   : > { %3845 = sst [smem:[#allocation17_spill]] %s3844_s28  ;;  %s2748_s30 = smov [#allocation5]  }
  0x15   : > { %p2873_p10 = pnand %p2166_p7, %p293_p8  ;;  %s333_s12 = sshll.u32 %s2748_s30, 4  ;;  %s2879_s12 = int_to_ptr.vmem [resolvable:$true] %s333_s12 }
  0x16   : > { %s2749_s14 = smov [#allocation2]   ;;  %s2750_s16 = smov [#allocation7]  }
  0x17   : > { %s3846_s29 = scalar_select %p2873_p10, 1, 0 }
  0x18   : > { %p2488_p11 = pneg %p2873_p10  ;;  %s305_s15 = sshll.u32 %s2749_s14, 4  ;;  %s2887_s15 = int_to_ptr.vmem [resolvable:$true] %s305_s15 }
  0x19   : > { %s2889_s22 = sshll.u32 %s2750_s16, 4  ;;  %s2592_s26 = scalar_lea.hbm %s3816_s7, 1024  ;;  %s350_s22 = int_to_ptr.vmem [resolvable:$true] %s2889_s22 }
  0x1a   : > { %p2883_p12 = pnand %p3824_p9, %p2488_p11  ;;  %p2593_p13 = scmp.ne.s32.totalorder %s3816_s7, %s2592_s26 }
  0x1b   : > { %p2599_p3 = scmp.lt.u32.totalorder %s2592_s26, %s3816_s7 }
  0x1c   : > { %p2899_p0 = pneg %p2883_p12 }
  0x1e   : > { %p2595_p1 = pnand %p2899_p0, %p2593_p13 }
  0x20   : > { %p2596_p2 = pneg %p2595_p1 }
  0x22   : > { %p2601_p4 = pnand %p2599_p3, %p2596_p2 }
  0x24   : > { %2604 = shalt.err (!%p2601_p4)
}
  0x25   : > { %s2605_s19 = scalar_lea.vmem %s2879_s12, 1024  ;;  %p2613_p9 = scmp.lt.s32.totalorder %s2879_s12, %s2879_s12 }
  0x26   : > { %p2606_p7 = scmp.ne.s32.totalorder %s2879_s12, %s2605_s19  ;;  %p2614_p6 = scmp.lt.s32.totalorder %s2605_s19, %s2605_s19 }
  0x28   : > { %p2608_p8 = pnand %p2606_p7, %p2899_p0  ;;  %p2615_p13 = por %p2614_p6, %p2613_p9 }
  0x2a   : > { %p2609_p11 = pneg %p2608_p8 }
  0x2c   : > { %p2616_p1 = pnand %p2615_p13, %p2609_p11 }
  0x2e   : > { %2619 = shalt.err (!%p2616_p1)
}
  0x2f   : > { %s2751_s24 = smov 128   ;;  %s2752_s26 = smov 8  }
  0x30   : > { %2494 = dma.hbm_to_vmem [thread:$0]  (!%p2883_p12), %s3816_s7, 1024, %s2879_s12, [#allocation6], %s2751_s24, %s2751_s24, %s2752_s26  }
  0x31   : > { %s2620_s19 = scalar_lea.hbm %s3810_s1, 512 }
  0x32   : > { %p2621_p6 = scmp.ne.s32.totalorder %s3810_s1, %s2620_s19  ;;  %p2627_p3 = scmp.lt.u32.totalorder %s2620_s19, %s3810_s1 }
  0x34   : > { %p2623_p9 = pnand %p2621_p6, %p2899_p0 }
  0x36   : > { %p2624_p2 = pneg %p2623_p9 }
  0x38   : > { %p2629_p4 = pnand %p2627_p3, %p2624_p2 }
  0x3a   : > { %2632 = shalt.err (!%p2629_p4)
}
  0x3b   : > { %s2633_s12 = scalar_lea.vmem %s2887_s15, 512  ;;  %p2641_p13 = scmp.lt.s32.totalorder %s2887_s15, %s2887_s15 }
  0x3c   : > { %p2634_p7 = scmp.ne.s32.totalorder %s2887_s15, %s2633_s12  ;;  %p2642_p1 = scmp.lt.s32.totalorder %s2633_s12, %s2633_s12 }
  0x3e   : > { %p2636_p8 = pnand %p2634_p7, %p2899_p0  ;;  %p2643_p6 = por %p2642_p1, %p2641_p13 }
  0x40   : > { %p2637_p11 = pneg %p2636_p8 }
  0x42   : > { %p2644_p9 = pnand %p2643_p6, %p2637_p11 }
  0x44   : > { %2647 = shalt.err (!%p2644_p9)
}
  0x45   : > { %2491 = dma.hbm_to_vmem [thread:$0]  (!%p2883_p12), %s3810_s1, 512, %s2887_s15, [#allocation3], %s2751_s24, %s2751_s24, %s2752_s26  }
  0x46   : > { %s2648_s25 = scalar_lea.hbm %s3818_s9, 1024 }
  0x47   : > { %p2649_p2 = scmp.ne.s32.totalorder %s3818_s9, %s2648_s25  ;;  %p2655_p7 = scmp.lt.u32.totalorder %s2648_s25, %s3818_s9 }
  0x49   : > { %p2651_p3 = pnand %p2649_p2, %p2899_p0 }
  0x4b   : > { %p2652_p4 = pneg %p2651_p3 }
  0x4d   : > { %p2657_p8 = pnand %p2655_p7, %p2652_p4 }
  0x4f   : > { %2660 = shalt.err (!%p2657_p8)
}
  0x50   : > { %s2661_s12 = scalar_lea.vmem %s350_s22, 1024  ;;  %p2669_p6 = scmp.lt.s32.totalorder %s350_s22, %s350_s22 }
  0x51   : > { %p2662_p11 = scmp.ne.s32.totalorder %s350_s22, %s2661_s12  ;;  %p2670_p9 = scmp.lt.s32.totalorder %s2661_s12, %s2661_s12 }
  0x53   : > { %p2664_p13 = pnand %p2662_p11, %p2899_p0  ;;  %p2671_p5 = por %p2670_p9, %p2669_p6 }
  0x55   : > { %p2665_p1 = pneg %p2664_p13 }
  0x57   : > { %p2672_p10 = pnand %p2671_p5, %p2665_p1 }
  0x59   : > { %2675 = shalt.err (!%p2672_p10)
}
  0x5a   : > { %2497 = dma.hbm_to_vmem [thread:$0]  (!%p2883_p12), %s3818_s9, 1024, %s350_s22, [#allocation6], %s2751_s24, %s2751_s24, %s2752_s26  }
  0x5b   : > { %p3849_p2 = scmp.ne.s32.totalorder %s3846_s29, 0 }
  0x5c   : > { %p3850_p0 = scmp.eq.s32.totalorder (!%p3849_p2), %s2845_s21, 0 }
  0x5d   : > { %375 = sbr.rel (%p3849_p2) target bundleno = 2086 (0x826), region = 64 }
  0x64   : > { %2721 = dma.done.wait (%p3850_p0), [#allocation3], 512   ;;  %p3851_p3 = pmov %p3850_p0 }
  0x65   : > { %p3852_p5 = pmov %p3850_p0 }
  0x66   : > { %2723 = vsyncadd (%p3851_p3), [#allocation3], 4294966784 }
  0x67   : > { %2725 = dma.done.wait (%p3852_p5), [#allocation6], 2048   ;;  %p3853_p10 = pmov %p3850_p0 }
  0x68   : > { %p422_p4 = scmp.lt.s32.totalorder %s2845_s21, 1  ;;  %v3832_v0 = vmov 0.0|0.0   ;;  %vm2754_vm0 = vmmov 0   ;;  %v2755_v1 = vmov 0.0   ;;  %v427_v2 = vld [vmem:[#allocation2] sm:$0xff]  ;;  %v428_v3 = vld [vmem:[#allocation2 + $0x8] sm:$0xff]  ;;  %v703_v53 = vlaneseq }
  0x69   : > { %2727 = vsyncadd (%p3853_p10), [#allocation6], 4294965248  ;;  %2384 = vmatprep.subr.bf16.mxu0 %v3832_v0  ;;  %2291 = vmatprep.mubr.msk.f32.mxu0 %vm2754_vm0, %v2755_v1  ;;  %v429_v4 = vld [vmem:[#allocation2 + $0x10] sm:$0xff]  ;;  %v2385_v5 = vpack.c.bf16 %v428_v3, %v427_v2  ;;  %v430_v6 = vld [vmem:[#allocation2 + $0x18] sm:$0xff]  ;;  %vm438_vm1 = vcmask 261120   ;;  %vm528_vm2 = vcmask 523264  }
  0x6a   : > { %2390 = vmatprep.subr.bf16.mxu1 %v3832_v0  ;;  %2310 = vmatprep.mubr.msk.f32.mxu1 %vm2754_vm0, %v2755_v1  ;;  %s423_s23 = scalar_select %p422_p4, %s2845_s21, 1  ;;  %v513_v7 = vld [vmem:[%s3812_s3] sm:$0xff]  ;;  %v514_v8 = vld [vmem:[%s3812_s3 + $0x8] sm:$0xff]  ;;  %v515_v9 = vld [vmem:[%s3812_s3 + $0x10] sm:$0xff]  ;;  %v2388_v11 = vpack.c.bf16 %v430_v6, %v429_v4  ;;  %vm691_vm3 = vcmask 64512   ;;  %v704_v54 = vshrl.u32 %v703_v53, 7 }
  0x6b   : > { %v516_v10 = vld [vmem:[%s3812_s3 + $0x18] sm:$0xff]  ;;  %2386 = vmatpush3.bf16.msra.mxu0 %v2385_v5  ;;  %v2391_v12 = vpack.c.bf16 %v514_v8, %v513_v7  ;;  %v517_v14 = vld [vmem:[%s3812_s3 + $0x20] sm:$0xff]  ;;  %v518_v15 = vld [vmem:[%s3812_s3 + $0x28] sm:$0xff]  ;;  %v706_v55 = vand.u32 127, %v703_v53  ;;  %v2756_v56 = vmov 1.0   ;;  %s419_s14 = sand.u32 1, %s2738_s18  }
  0x6c   : > { %s2176_s29 = sshll.u32 %s423_s23, 3  ;;  %2387 = vmatprep.subr.bf16.mxu0 %v3832_v0  ;;  %v2394_v13 = vpack.c.bf16 %v516_v10, %v515_v9  ;;  %v2397_v17 = vpack.c.bf16 %v518_v15, %v517_v14  ;;  %v519_v18 = vld [vmem:[%s3812_s3 + $0x30] sm:$0xff]  ;;  %v520_v19 = vld [vmem:[%s3812_s3 + $0x38] sm:$0xff]  ;;  %v603_v21 = vld [vmem:[%s3814_s5] sm:$0xff]  ;;  %v797_v58 = vsub.s32 1, %v704_v54  ;;  %v811_v59 = vsub.s32 3, %v704_v54 }
  0x6d   : > { %s425_s16 = scalar_lea.vmem %s3809_s0, %s2176_s29  ;;  %2392 = vmatpush3.bf16.msra.mxu1 %v2391_v12  ;;  %v2400_v20 = vpack.c.bf16 %v520_v19, %v519_v18  ;;  %v604_v22 = vld [vmem:[%s3814_s5 + $0x8] sm:$0xff]  ;;  %v605_v23 = vld [vmem:[%s3814_s5 + $0x10] sm:$0xff]  ;;  %v606_v25 = vld [vmem:[%s3814_s5 + $0x18] sm:$0xff]  ;;  %vm707_vm4 = vcmp.le.s32.totalorder %v704_v54, %v706_v55  ;;  %v825_v60 = vsub.s32 5, %v704_v54  ;;  %v804_v62 = vsub.s32 2, %v704_v54  ;;  %s2230_s15 = sshll.u32 %s2845_s21, 7 }
  0x6e   : > { %2393 = vmatprep.subr.bf16.mxu1 %v3832_v0  ;;  %v426_v16 = vld [vmem:[%s425_s16] sm:$0xff]  ;;  %v2403_v24 = vpack.c.bf16 %v604_v22, %v603_v21  ;;  %v2406_v26 = vpack.c.bf16 %v606_v25, %v605_v23  ;;  %v608_v28 = vld [vmem:[%s3814_s5 + $0x28] sm:$0xff]  ;;  %v609_v35 = vld [vmem:[%s3814_s5 + $0x30] sm:$0xff]  ;;  %v790_v63 = vsub.s32 0, %v704_v54  ;;  %v818_v2 = vsub.s32 4, %v704_v54  ;;  %s2175_s16 = sshll.u32 %s419_s14, 3 }
  0x6f   : > { %2389 = vmatpush3.bf16.msra.mxu0 %v2388_v11  ;;  %v607_v27 = vld [vmem:[%s3814_s5 + $0x20] sm:$0xff]  ;;  %v610_v36 = vld [vmem:[%s3814_s5 + $0x38] sm:$0xff]  ;;  %v839_v3 = vsub.s32 7, %v704_v54  ;;  %v832_v5 = vsub.s32 6, %v704_v54  ;;  %s421_s11 = scalar_lea.vmem [#allocation8], %s2175_s16  ;;  %s3875_s22 = sld [smem:[#allocation18_spill]] }
  0x70   : > { %2402 = vmatprep.subr.bf16.mxu0 %v3832_v0  ;;  %v2409_v29 = vpack.c.bf16 %v608_v28, %v607_v27  ;;  %v2177_v30 = vld [vmem:[%s3811_s2] ss:$0 sm:$0xff]  ;;  %v2412_v37 = vpack.c.bf16 %v610_v36, %v609_v35  ;;  %s2075_s23 = sshll.u32 %s421_s11, 4  ;;  %s2062_s26 = scalar_lea.sflag [#allocation4], %s419_s14  ;;  %s3769_s23 = int_to_ptr.vmem [resolvable:$true] %s2075_s23 }
  0x71   : > { %2395 = vmatpush3.bf16.msra.mxu1 %v2394_v13  ;;  %v2179_v38 = vld [vmem:[%s3813_s4] ss:$0 sm:$0xff]  ;;  %s2676_s17 = scalar_lea.vmem %s3769_s23, 128  ;;  %p3876_p7 = scmp.ne.s32.totalorder %s3843_s27, 0 }
  0x72   : > { %2292 = vmatmul.mubr.msk.f32.vlgmr.msra.gmra.mrb[0].mxu0 %vm438_vm1, %v426_v16  ;;  %2396 = vmatprep.subr.bf16.mxu1 %v3832_v0  ;;  %v2181_v43 = vld [vmem:[%s3815_s6] ss:$0 sm:$0xff]  ;;  %p2677_p12 = scmp.ne.s32.totalorder %s3769_s23, %s2676_s17  ;;  %s2763_s21 = smov [#allocation8]  }
  0x73   : > { %2329 = vmatprep.mubr.msk.f32.mxu0 %vm2754_vm0, %v2755_v1  ;;  %2404 = vmatpush3.bf16.msra.mxu0 %v2403_v24  ;;  %s2680_s20 = sshll.u32 %s2763_s21, 4  ;;  %s2681_s20 = int_to_ptr.vmem [resolvable:$false] %s2680_s20 }
  0x74   : > { %2405 = vmatprep.subr.bf16.mxu0 %v3832_v0  ;;  %p2678_p8 = pnand %p2677_p12, %p3876_p7  ;;  %s2682_s28 = scalar_lea.vmem %s2681_s20, 256 }
  0x75   : > { %2398 = vmatpush3.bf16.msra.mxu1 %v2397_v17  ;;  %s3767_s24 = scalar_lea.hbm %s3875_s22, %s2230_s15  ;;  %p2683_p13 = scmp.lt.s32.totalorder %s3769_s23, %s2681_s20 }
  0x76   : > { %2399 = vmatprep.subr.bf16.mxu1 %v3832_v0  ;;  %p2679_p11 = pneg %p2678_p8  ;;  %p2684_p1 = scmp.lt.s32.totalorder %s2682_s28, %s2676_s17 }
  0x77   : > { %2407 = vmatpush3.bf16.msra.mxu0 %v2406_v26 }
  0x78   : > { %2408 = vmatprep.subr.bf16.mxu0 %v3832_v0  ;;  %p2685_p6 = por %p2684_p1, %p2683_p13 }
  0x79   : > { %2401 = vmatpush3.bf16.msra.mxu1 %v2400_v20 }
  0x7a   : > { %p2686_p9 = pnand %p2685_p6, %p2679_p11 }
  0x7b   : > { %2410 = vmatpush3.bf16.msra.mxu0 %v2409_v29 }
  0x7c   : > { %2411 = vmatprep.subr.bf16.mxu0 %v3832_v0 }
  0x7f   : > { %2413 = vmatpush3.bf16.msra.mxu0 %v2412_v37 }
  0x80   : > { %2332 = vmatprep.subr.mxu0 %v2755_v1 }
 0x145   : > { %v508_v31 = vpop.f32.mrb[0].mxu0 }
 0x146   : > { %v509_v32 = vadd.f32 %v2177_v30, %v508_v31  ;;  %v2293_v33 = vpop.f32.mrb[1].mxu0 }
 0x148   : > { %v512_v34 = vmax.f32 %v509_v32, 0.0 }
 0x14a   : > { %2311 = vmatmul.mubr.msk.f32.vlgmr.msra.gmra.mrb[0].mxu1 %vm528_vm2, %v512_v34 }
 0x21d   : > { %v598_v39 = vpop.f32.mrb[0].mxu1 }
 0x21e   : > { %v3058_v40 = vadd.f32 %v2179_v38, %v598_v39  ;;  %v2312_v41 = vpop.f32.mrb[1].mxu1 }
 0x220   : > { %v3831_v42 = vmax.f32 %v3058_v40, 0.0 }
 0x222   : > { %2330 = vmatmul.mubr.msk.f32.vlgmr.msra.gmra.mrb[2].mxu0 %vm528_vm2, %v3831_v42 }
 0x223   : > { %2334 = vmatprep.mubr.msk.f32.mxu0 %vm2754_vm0, %v2755_v1  ;;  %2333 = vmatpush3.msk.msra.mxu0 %vm707_vm4, %v2756_v56 }
 0x224   : > { %2430 = vmatprep.subr.bf16.mxu0 %v3832_v0 }
 0x2f5   : > { %v687_v44 = vpop.f32.mrb[2].mxu0 }
 0x2f6   : > { %v688_v45 = vadd.f32 %v2181_v43, %v687_v44  ;;  %v2331_v46 = vpop.f32.mrb[3].mxu0 }
 0x2f8   : > { %v692_v47 = vsel %vm691_vm3, %v688_v45, -inf }
 0x2f9   : > { %693 = vmax.xlane.f32.xlu0 %v692_v47 }
 0x386   : > { %v694_v48 = vpop.xlane.xlu0 %693 }
 0x387   : > { %v695_v49 = vsub.f32 %v688_v45, %v694_v48 }
 0x389   : > { %v696_v50 = vmul.f32 1.442695, %v695_v49 }
 0x38b   : > { %2556 = vpow2.f32 %v696_v50 }
 0x395   : > { %v2557_v51 = vpop.eup %2556 }
 0x396   : > { %v698_v52 = vsel %vm691_vm3, %v2557_v51, 0.0 }
 0x397   : > { %699 = vadd.xlane.f32.xlu0 %v698_v52 }
 0x424   : > { %v700_v57 = vpop.xlane.xlu0 %699 }
 0x425   : > { %2558 = vrcp.f32 %v700_v57 }
 0x42f   : > { %v2559_v61 = vpop.eup %2558 }
 0x430   : > { %v702_v4 = vmul.f32 %v2559_v61, %v2557_v51 }
 0x432   : > { %2335 = vmatmul.mubr.msk.f32.vlgmr.msra.gmra.mrb[4].mxu0 %vm691_vm3, %v702_v4  ;;  %v1838_v6 = vrot.slane %v702_v4, %v797_v58  ;;  %v1852_v7 = vrot.slane %v702_v4, %v811_v59  ;;  %v1866_v8 = vrot.slane %v702_v4, %v825_v60  ;;  %v1880_v9 = vrot.slane %v702_v4, %v839_v3 }
 0x433   : > { %v1831_v10 = vrot.slane %v702_v4, %v790_v63  ;;  %v1845_v11 = vrot.slane %v702_v4, %v804_v62  ;;  %v1859_v12 = vrot.slane %v702_v4, %v818_v2  ;;  %2381 = vmatprep.mubr.msk.f32.mxu0 %vm2754_vm0, %v2755_v1  ;;  %v1873_v13 = vrot.slane %v702_v4, %v832_v5 }
 0x434   : > { %v783_v14 = vmul.f32 0.5, %v702_v4  ;;  %v785_v1 = vadd.s32 1, %v706_v55  ;;  %v2757_v4 = vmov 683565275  }
 0x436   : > { %v786_v26 = vcvt.s32.f32 %v785_v1 }
 0x438   : > { %v3075_v27 = vmul.f32 3.1415927, %v786_v26 }
 0x505   : > { %v779_v15 = vpop.f32.mrb[4].mxu0 }
 0x506   : > { %v784_v16 = vsub.f32 %v779_v15, %v783_v14  ;;  %v2336_v17 = vpop.f32.mrb[5].mxu0 }
 0x508   : > { %v805_v18 = vrot.slane %v784_v16, %v804_v62  ;;  %v791_v19 = vrot.slane %v784_v16, %v790_v63  ;;  %v798_v20 = vrot.slane %v784_v16, %v797_v58  ;;  %v812_v21 = vrot.slane %v784_v16, %v811_v59 }
 0x509   : > { %v819_v22 = vrot.slane %v784_v16, %v818_v2  ;;  %v826_v23 = vrot.slane %v784_v16, %v825_v60  ;;  %v833_v24 = vrot.slane %v784_v16, %v832_v5  ;;  %v840_v25 = vrot.slane %v784_v16, %v839_v3 }
 0x50a   : > { %807 = vbcast.lane.b32.xlu0 %v805_v18, 256  ;;  %793 = vbcast.lane.b32.xlu1 %v791_v19, 256 }
 0x50e   : > { %1840 = vbcast.lane.b32.xlu0 %v1838_v6, 256  ;;  %800 = vbcast.lane.b32.xlu1 %v798_v20, 256  ;;  %v2758_v6 = vmov 2475754826   ;;  %v2762_v20 = vmov 1326507024  }
 0x512   : > { %1854 = vbcast.lane.b32.xlu0 %v1852_v7, 256  ;;  %814 = vbcast.lane.b32.xlu1 %v812_v21, 256 }
 0x516   : > { %1868 = vbcast.lane.b32.xlu0 %v1866_v8, 256  ;;  %821 = vbcast.lane.b32.xlu1 %v819_v22, 256 }
 0x51a   : > { %1882 = vbcast.lane.b32.xlu0 %v1880_v9, 256  ;;  %828 = vbcast.lane.b32.xlu1 %v826_v23, 256  ;;  %v2759_v9 = vmov 2131351028  }
 0x51e   : > { %835 = vbcast.lane.b32.xlu1 %v833_v24, 256 }
 0x522   : > { %842 = vbcast.lane.b32.xlu1 %v840_v25, 256 }
 0x526   : > { %1833 = vbcast.lane.b32.xlu1 %v1831_v10, 256 }
 0x52a   : > { %1847 = vbcast.lane.b32.xlu1 %v1845_v11, 256  ;;  %v2760_v11 = vmov 2102212464  }
 0x52e   : > { %1861 = vbcast.lane.b32.xlu1 %v1859_v12, 256 }
 0x532   : > { %1875 = vbcast.lane.b32.xlu1 %v1873_v13, 256  ;;  %v2761_v13 = vmov 920167782  }
 0x57c   : > { %v808_v28 = vpop.permute.xlu0 %807  ;;  %v794_v29 = vpop.permute.xlu1 %793 }
 0x57d   : > { %v3078_v30 = vmul.f32 %v808_v28, %v3075_v27  ;;  %v3081_v31 = vmul.f32 %v794_v29, %v3075_v27 }
 0x57f   : > { %v1058_v32 = vand.u32 2147483647, %v3078_v30  ;;  %v1061_v33 = vand.u32 2139095040, %v3078_v30  ;;  %v852_v34 = vand.u32 2147483647, %v3081_v31  ;;  %v855_v35 = vand.u32 2139095040, %v3081_v31 }
 0x580   : > { %v801_v36 = vpop.permute.xlu1 %800 }
 0x581   : > { %v1062_v37 = vshrl.u32 %v1061_v33, 23  ;;  %v1065_v38 = vand.u32 8388607, %v1058_v32  ;;  %v859_v39 = vand.u32 8388607, %v852_v34  ;;  %v3092_v41 = vmul.f32 %v801_v36, %v3075_v27 }
 0x582   : > { %v856_v43 = vshrl.u32 %v855_v35, 23 }
 0x583   : > { %v2194_v44 = vadd.s32 4294967169, %v1062_v37  ;;  %v1066_v45 = vor.u32 8388608, %v1065_v38  ;;  %v958_v47 = vand.u32 2139095040, %v3092_v41  ;;  %v860_v49 = vor.u32 8388608, %v859_v39 }
 0x584   : > { %v2186_v46 = vadd.s32 4294967169, %v856_v43  ;;  %v955_v51 = vand.u32 2147483647, %v3092_v41  ;;  %v815_v53 = vpop.permute.xlu1 %814 }
 0x585   : > { %v1068_v48 = vadd.s32 1, %v2194_v44  ;;  %v959_v52 = vshrl.u32 %v958_v47, 23  ;;  %v3096_v55 = vshll.u32 %v1066_v45, 8  ;;  %v3098_v60 = vshll.u32 %v860_v49, 8 }
 0x586   : > { %v862_v50 = vadd.s32 1, %v2186_v46  ;;  %v3104_v63 = vand.u32 8388607, %v955_v51  ;;  %v3107_v2 = vmul.f32 %v815_v53, %v3075_v27 }
 0x587   : > { %vm1069_vm5 = vcmp.gt.s32.totalorder %v1068_v48, 0  ;;  %v2190_v56 = vadd.s32 4294967169, %v959_v52 }
 0x588   : > { %v1070_v54 = vsel %vm1069_vm5, %v1068_v48, 0  ;;  %vm863_vm6 = vcmp.gt.s32.totalorder %v862_v50, 0 }
 0x589   : > { %v1071_v57 = vshrl.u32 %v1070_v54, 5  ;;  %v1072_v58 = vand.u32 31, %v1070_v54  ;;  %v864_v59 = vsel %vm863_vm6, %v862_v50, 0  ;;  %v3111_v8 = vadd.s32 1, %v2190_v56 }
 0x58a   : > { %v3100_v61 = vshrl.u32 %v864_v59, 5  ;;  %v866_v62 = vand.u32 31, %v864_v59 }
 0x58b   : > { %v1073_v3 = vsub.s32 32, %v1072_v58  ;;  %v1075_v5 = vshll.u32 %v2757_v4, %v1072_v58  ;;  %v1078_v7 = vshll.u32 %v2758_v6, %v1072_v58  ;;  %v1081_v10 = vshll.u32 %v2759_v9, %v1072_v58 }
 0x58c   : > { %v1084_v12 = vshll.u32 %v2760_v11, %v1072_v58  ;;  %v1087_v14 = vshll.u32 %v2761_v13, %v1072_v58  ;;  %vm1090_vm7 = vcmp.lt.s32.totalorder %v1071_v57, 1  ;;  %vm1091_vm8 = vcmp.lt.s32.totalorder %v1071_v57, 2 }
 0x58d   : > { %v1076_v15 = vshrl.u32 %v2758_v6, %v1073_v3  ;;  %v1079_v16 = vshrl.u32 %v2759_v9, %v1073_v3  ;;  %v1082_v17 = vshrl.u32 %v2760_v11, %v1073_v3  ;;  %v1074_v18 = vshrl.u32 %v2757_v4, %v1073_v3 }
 0x58e   : > { %v1085_v19 = vshrl.u32 %v2761_v13, %v1073_v3  ;;  %v1088_v21 = vshrl.u32 %v2762_v20, %v1073_v3  ;;  %vm1092_vm9 = vcmp.lt.s32.totalorder %v1071_v57, 3  ;;  %v867_v25 = vsub.s32 32, %v866_v62 }
 0x58f   : > { %v1077_v22 = vor.u32 %v1076_v15, %v1075_v5  ;;  %v1080_v23 = vor.u32 %v1079_v16, %v1078_v7  ;;  %v1083_v24 = vor.u32 %v1082_v17, %v1081_v10  ;;  %vm1093_vm10 = vcmp.lt.s32.totalorder %v1071_v57, 4 }
 0x590   : > { %v1086_v1 = vor.u32 %v1085_v19, %v1084_v12  ;;  %v1089_v26 = vor.u32 %v1088_v21, %v1087_v14  ;;  %v869_v28 = vshll.u32 %v2757_v4, %v866_v62  ;;  %v872_v43 = vshll.u32 %v2758_v6, %v866_v62 }
 0x591   : > { %v1094_v29 = vsel %vm1090_vm7, %v1074_v18, %v1077_v22  ;;  %v1095_v33 = vsel %vm1093_vm10, %v1083_v24, 2102212464  ;;  %v1098_v35 = vsel %vm1090_vm7, %v1077_v22, %v1080_v23  ;;  %v1102_v36 = vsel %vm1090_vm7, %v1080_v23, %v1083_v24 }
 0x592   : > { %v1096_v37 = vsel %vm1092_vm9, %v1080_v23, %v1095_v33  ;;  %v1099_v38 = vsel %vm1093_vm10, %v1086_v1, 920167782  ;;  %v1103_v39 = vsel %vm1093_vm10, %v1089_v26, 1326507024  ;;  %v868_v46 = vshrl.u32 %v2757_v4, %v867_v25 }
 0x593   : > { %v1100_v44 = vsel %vm1092_vm9, %v1083_v24, %v1099_v38  ;;  %v1104_v45 = vsel %vm1092_vm9, %v1086_v1, %v1103_v39  ;;  %v870_v47 = vshrl.u32 %v2758_v6, %v867_v25  ;;  %v1097_v48 = vsel %vm1091_vm8, %v1094_v29, %v1096_v37 }
 0x594   : > { %v1101_v49 = vsel %vm1091_vm8, %v1098_v35, %v1100_v44  ;;  %v1105_v50 = vsel %vm1091_vm8, %v1102_v36, %v1104_v45  ;;  %v873_v52 = vshrl.u32 %v2759_v9, %v867_v25  ;;  %v875_v5 = vshll.u32 %v2759_v9, %v866_v62 }
 0x595   : > { %v3137_v53 = vmul.u32.u64.low %v3096_v55, %v1105_v50  ;;  %v3138_v54 = vmul.u32.u64.high %v3096_v55, %v1105_v50, %v3137_v53  ;;  %v3141_v56 = vmul.u32.u64.low %v3096_v55, %v1101_v49  ;;  %v3142_v58 = vmul.u32.u64.high %v3096_v55, %v1101_v49, %v3141_v56 }
 0x596   : > { %v871_v59 = vor.u32 %v870_v47, %v869_v28  ;;  %v874_v3 = vor.u32 %v873_v52, %v872_v43  ;;  %v876_v7 = vshrl.u32 %v2760_v11, %v867_v25  ;;  %v1113_v10 = vmul.u32 %v3096_v55, %v1097_v48 }
 0x597   : > { %v878_v57 = vshll.u32 %v2760_v11, %v866_v62  ;;  %v879_v12 = vshrl.u32 %v2761_v13, %v867_v25  ;;  %v882_v14 = vshrl.u32 %v2762_v20, %v867_v25  ;;  %v881_v16 = vshll.u32 %v2761_v13, %v866_v62 }
 0x598   : > { %v877_v15 = vor.u32 %v876_v7, %v875_v5  ;;  %vm884_vm11 = vcmp.lt.s32.totalorder %v3100_v61, 1  ;;  %vm885_vm12 = vcmp.lt.s32.totalorder %v3100_v61, 2  ;;  %vm1115_vm13 = vc.u32 %v3138_v54, %v3141_v56 }
 0x599   : > { %v1116_v17 = vadd.s32 1, %v3142_v58  ;;  %v880_v18 = vor.u32 %v879_v12, %v878_v57  ;;  %vm886_vm14 = vcmp.lt.s32.totalorder %v3100_v61, 3  ;;  %v883_v55 = vor.u32 %v882_v14, %v881_v16 }
 0x59a   : > { %vm887_vm15 = vcmp.lt.s32.totalorder %v3100_v61, 4  ;;  %v888_v19 = vsel %vm884_vm11, %v868_v46, %v871_v59  ;;  %v892_v21 = vsel %vm884_vm11, %v871_v59, %v874_v3  ;;  %v896_v24 = vsel %vm884_vm11, %v874_v3, %v877_v15 }
 0x59b   : > { %v1117_v22 = vsel %vm1115_vm13, %v1116_v17, %v3142_v58  ;;  %v889_v23 = vsel %vm887_vm15, %v877_v15, 2102212464  ;;  %v893_v62 = vsel %vm887_vm15, %v880_v18, 920167782  ;;  %v897_v28 = vsel %vm887_vm15, %v883_v55, 1326507024 }
 0x59c   : > { %v1118_v25 = vadd.s32 %v1117_v22, %v1113_v10  ;;  %v890_v1 = vsel %vm886_vm14, %v874_v3, %v889_v23  ;;  %v894_v26 = vsel %vm886_vm14, %v877_v15, %v893_v62  ;;  %v898_v33 = vsel %vm886_vm14, %v880_v18, %v897_v28 }
 0x59d   : > { %v895_v29 = vsel %vm885_vm12, %v892_v21, %v894_v26  ;;  %v963_v35 = vor.u32 8388608, %v3104_v63  ;;  %vm966_vm0 = vcmp.gt.s32.totalorder %v3111_v8, 0  ;;  %v899_v37 = vsel %vm885_vm12, %v896_v24, %v898_v33 }
 0x59e   : > { %v1119_v36 = vadd.s32 536870912, %v1118_v25  ;;  %v3165_v38 = vmul.u32.u64.low %v3098_v60, %v895_v29  ;;  %v3166_v39 = vmul.u32.u64.high %v3098_v60, %v895_v29, %v3165_v38  ;;  %v891_v43 = vsel %vm885_vm12, %v888_v19, %v890_v1 }
 0x59f   : > { %v3172_v44 = vmul.u32.u64.low %v3098_v60, %v899_v37  ;;  %v3173_v45 = vmul.u32.u64.high %v3098_v60, %v899_v37, %v3172_v44  ;;  %v967_v63 = vsel %vm966_vm0, %v3111_v8, 0  ;;  %v3179_v48 = vadd.s32 %v3141_v56, %v3138_v54 }
 0x5a0   : > { %v3176_v46 = vshrl.u32 %v1119_v36, 30  ;;  %v969_v47 = vand.u32 31, %v967_v63  ;;  %v3181_v49 = vshll.u32 %v963_v35, 8  ;;  %v1161_v50 = vand.u32 2147483647, %v3107_v2 }
 0x5a1   : > { %v907_v61 = vmul.u32 %v3098_v60, %v891_v43  ;;  %v910_v53 = vadd.s32 1, %v3166_v39  ;;  %vm909_vm1 = vc.u32 %v3173_v45, %v3165_v38  ;;  %v968_v8 = vshrl.u32 %v967_v63, 5 }
 0x5a2   : > { %v1121_v52 = vshll.u32 %v3176_v46, 30  ;;  %v970_v58 = vsub.s32 32, %v969_v47  ;;  %v972_v59 = vshll.u32 %v2757_v4, %v969_v47  ;;  %v975_v54 = vshll.u32 %v2758_v6, %v969_v47 }
 0x5a3   : > { %v911_v3 = vsel %vm909_vm1, %v910_v53, %v3166_v39  ;;  %v978_v7 = vshll.u32 %v2759_v9, %v969_v47  ;;  %v981_v12 = vshll.u32 %v2760_v11, %v969_v47  ;;  %v984_v17 = vshll.u32 %v2761_v13, %v969_v47 }
 0x5a4   : > { %v3191_v56 = vsub.s32 %v1118_v25, %v1121_v52  ;;  %v973_v5 = vshrl.u32 %v2758_v6, %v970_v58  ;;  %v912_v60 = vadd.s32 %v911_v3, %v907_v61  ;;  %v976_v10 = vshrl.u32 %v2759_v9, %v970_v58 }
 0x5a5   : > { %v979_v57 = vshrl.u32 %v2760_v11, %v970_v58  ;;  %v982_v16 = vshrl.u32 %v2761_v13, %v970_v58  ;;  %v985_v21 = vshrl.u32 %v2762_v20, %v970_v58  ;;  %v971_v23 = vshrl.u32 %v2757_v4, %v970_v58 }
 0x5a6   : > { %v1124_v14 = vsub.s32 0, %v3191_v56  ;;  %v974_v15 = vor.u32 %v973_v5, %v972_v59  ;;  %v913_v18 = vadd.s32 536870912, %v912_v60  ;;  %v977_v55 = vor.u32 %v976_v10, %v975_v54  ;;  %v822_v54 = vpop.permute.xlu1 %821 }
 0x5a7   : > { %v980_v19 = vor.u32 %v979_v57, %v978_v7  ;;  %v983_v62 = vor.u32 %v982_v16, %v981_v12  ;;  %v1164_v24 = vand.u32 2139095040, %v3107_v2  ;;  %v986_v1 = vor.u32 %v985_v21, %v984_v17 }
 0x5a8   : > { %v2195_v22 = vmin.u32 %v1124_v14, %v3191_v56  ;;  %v3206_v25 = vshrl.u32 %v913_v18, 30  ;;  %vm987_vm3 = vcmp.lt.s32.totalorder %v968_v8, 1  ;;  %vm990_vm4 = vcmp.lt.s32.totalorder %v968_v8, 4 }
 0x5a9   : > { %vm988_vm5 = vcmp.lt.s32.totalorder %v968_v8, 2  ;;  %v992_v28 = vsel %vm990_vm4, %v980_v19, 2102212464  ;;  %v995_v29 = vsel %vm987_vm3, %v974_v15, %v977_v55  ;;  %vm989_vm6 = vcmp.lt.s32.totalorder %v968_v8, 3 }
 0x5aa   : > { %v1126_v26 = vclz %v2195_v22  ;;  %v915_v33 = vshll.u32 %v3206_v25, 30  ;;  %v996_v35 = vsel %vm990_vm4, %v983_v62, 920167782  ;;  %v999_v36 = vsel %vm987_vm3, %v977_v55, %v980_v19 }
 0x5ab   : > { %v991_v39 = vsel %vm987_vm3, %v971_v23, %v974_v15  ;;  %v997_v43 = vsel %vm989_vm6, %v980_v19, %v996_v35  ;;  %v1000_v44 = vsel %vm990_vm4, %v986_v1, 1326507024  ;;  %v993_v47 = vsel %vm989_vm6, %v977_v55, %v992_v28 }
 0x5ac   : > { %v2196_v37 = vadd.s32 4294967294, %v1126_v26  ;;  %v3209_v63 = vsub.s32 %v912_v60, %v915_v33  ;;  %v998_v52 = vsel %vm988_vm5, %v995_v29, %v997_v43  ;;  %v1001_v61 = vsel %vm989_vm6, %v983_v62, %v1000_v44  ;;  %v829_v26 = vpop.permute.xlu1 %828 }
 0x5ad   : > { %v1002_v53 = vsel %vm988_vm5, %v999_v36, %v1001_v61  ;;  %v3214_v58 = vmul.u32.u64.low %v3181_v49, %v998_v52  ;;  %v3215_v59 = vmul.u32.u64.high %v3181_v49, %v998_v52, %v3214_v58  ;;  %v994_v12 = vsel %vm988_vm5, %v991_v39, %v993_v47 }
 0x5ae   : > { %vm2197_vm7 = vcmp.lt.s32.totalorder %v2196_v37, 0  ;;  %v918_v5 = vsub.s32 0, %v3209_v63  ;;  %v3219_v7 = vmul.u32.u64.low %v3181_v49, %v1002_v53  ;;  %v3220_v10 = vmul.u32.u64.high %v3181_v49, %v1002_v53, %v3219_v7 }
 0x5af   : > { %v1129_v3 = vsel %vm2197_vm7, 0, %v2196_v37  ;;  %v1165_v14 = vshrl.u32 %v1164_v24, 23  ;;  %v1168_v16 = vand.u32 8388607, %v1161_v50  ;;  %v3227_v17 = vmul.f32 %v822_v54, %v3075_v27 }
 0x5b0   : > { %v1130_v60 = vsub.s32 32, %v1129_v3  ;;  %v1134_v57 = vsub.s32 4294967266, %v1129_v3  ;;  %v2187_v15 = vmin.u32 %v918_v5, %v3209_v63  ;;  %v1013_v19 = vadd.s32 1, %v3215_v59 }
 0x5b1   : > { %v2198_v21 = vadd.s32 4294967169, %v1165_v14  ;;  %v1010_v23 = vmul.u32 %v3181_v49, %v994_v12  ;;  %vm1012_vm8 = vc.u32 %v3220_v10, %v3214_v58  ;;  %v1131_v8 = vshll.u32 %v3191_v56, %v1129_v3 }
 0x5b2   : > { %v1132_v18 = vshrl.u32 %v3179_v48, %v1130_v60  ;;  %v1135_v55 = vadd.s32 127, %v1134_v57  ;;  %v920_v22 = vclz %v2187_v15  ;;  %v1014_v24 = vsel %vm1012_vm8, %v1013_v19, %v3215_v59 }
 0x5b3   : > { %v1171_v1 = vadd.s32 1, %v2198_v21  ;;  %v1015_v29 = vadd.s32 %v1014_v24, %v1010_v23  ;;  %v1169_v33 = vor.u32 8388608, %v1168_v16  ;;  %v1264_v36 = vand.u32 2147483647, %v3227_v17 }
 0x5b4   : > { %v1136_v62 = vshll.u32 %v1135_v55, 23  ;;  %v2188_v28 = vadd.s32 4294967294, %v920_v22  ;;  %v1133_v48 = vor.u32 %v1132_v18, %v1131_v8  ;;  %v3237_v39 = vmul.f32 %v829_v26, %v3075_v27 }
 0x5b5   : > { %vm1172_vm9 = vcmp.gt.s32.totalorder %v1171_v1, 0  ;;  %v1016_v37 = vadd.s32 536870912, %v1015_v29  ;;  %v908_v43 = vadd.s32 %v3165_v38, %v3173_v45  ;;  %v3242_v61 = vadd.s32 %v3214_v58, %v3220_v10 }
 0x5b6   : > { %v1137_v35 = vor.u32 4788187, %v1136_v62  ;;  %vm2189_vm10 = vcmp.lt.s32.totalorder %v2188_v28, 0  ;;  %v1173_v49 = vsel %vm1172_vm9, %v1171_v1, 0  ;;  %v3246_v59 = vshll.u32 %v1169_v33, 8 }
 0x5b7   : > { %v923_v44 = vsel %vm2189_vm10, 0, %v2188_v28  ;;  %v1175_v47 = vand.u32 31, %v1173_v49  ;;  %v3244_v53 = vshrl.u32 %v1016_v37, 30  ;;  %v1140_v54 = vcvt.s32.f32 %v1133_v48 }
 0x5b8   : > { %v1138_v56 = vand.u32 2147483647, %v1137_v35  ;;  %v928_v52 = vsub.s32 4294967266, %v923_v44  ;;  %v1267_v5 = vand.u32 2139095040, %v3227_v17  ;;  %v3251_v7 = vand.u32 8388607, %v1264_v36 }
 0x5b9   : > { %v1176_v3 = vsub.s32 32, %v1175_v47  ;;  %v924_v60 = vsub.s32 32, %v923_v44  ;;  %v1018_v45 = vshll.u32 %v3244_v53, 30  ;;  %v3835_v57 = vand.u32 2147483647, %v3237_v39 }
 0x5ba   : > { %v929_v38 = vadd.s32 127, %v928_v52  ;;  %v3255_v58 = vmul.f32 %v1140_v54, %v1138_v56  ;;  %v1178_v10 = vshll.u32 %v2757_v4, %v1175_v47  ;;  %v1181_v16 = vshll.u32 %v2758_v6, %v1175_v47 }
 0x5bb   : > { %v1179_v12 = vshrl.u32 %v2758_v6, %v1176_v3  ;;  %v1182_v14 = vshrl.u32 %v2759_v9, %v1176_v3  ;;  %v3260_v15 = vsub.s32 %v1015_v29, %v1018_v45  ;;  %v1184_v18 = vshll.u32 %v2759_v9, %v1175_v47 }
 0x5bc   : > { %v1185_v55 = vshrl.u32 %v2760_v11, %v1176_v3  ;;  %v925_v19 = vshll.u32 %v3209_v63, %v923_v44  ;;  %v930_v21 = vshll.u32 %v929_v38, 23  ;;  %v1174_v22 = vshrl.u32 %v1173_v49, 5 }
 0x5bd   : > { %v1268_v23 = vshrl.u32 %v1267_v5, 23  ;;  %v1021_v8 = vsub.s32 0, %v3260_v15  ;;  %v1180_v62 = vor.u32 %v1179_v12, %v1178_v10  ;;  %v1183_v24 = vor.u32 %v1182_v14, %v1181_v16 }
 0x5be   : > { %v1186_v1 = vor.u32 %v1185_v55, %v1184_v18  ;;  %v1187_v26 = vshll.u32 %v2760_v11, %v1175_v47  ;;  %v1188_v28 = vshrl.u32 %v2761_v13, %v1176_v3  ;;  %v1190_v29 = vshll.u32 %v2761_v13, %v1175_v47 }
 0x5bf   : > { %v1191_v33 = vshrl.u32 %v2762_v20, %v1176_v3  ;;  %v1142_v48 = vxor.u32 2147483648, %v3255_v58  ;;  %v926_v35 = vshrl.u32 %v908_v43, %v924_v60  ;;  %v2191_v63 = vmin.u32 %v1021_v8, %v3260_v15 }
 0x5c0   : > { %v1177_v37 = vshrl.u32 %v2757_v4, %v1176_v3  ;;  %v931_v49 = vor.u32 4788187, %v930_v21  ;;  %v1189_v56 = vor.u32 %v1188_v28, %v1187_v26  ;;  %vm1196_vm11 = vcmp.lt.s32.totalorder %v1174_v22, 4 }
 0x5c1   : > { %v1192_v44 = vor.u32 %v1191_v33, %v1190_v29  ;;  %v1023_v52 = vclz %v2191_v63  ;;  %vm1193_vm12 = vcmp.lt.s32.totalorder %v1174_v22, 1  ;;  %vm1195_vm13 = vcmp.lt.s32.totalorder %v1174_v22, 3 }
 0x5c2   : > { %v1198_v54 = vsel %vm1196_vm11, %v1186_v1, 2102212464  ;;  %v1201_v5 = vsel %vm1193_vm12, %v1180_v62, %v1183_v24  ;;  %v1202_v38 = vsel %vm1196_vm11, %v1189_v56, 920167782  ;;  %v1205_v47 = vsel %vm1193_vm12, %v1183_v24, %v1186_v1 }
 0x5c3   : > { %v1206_v45 = vsel %vm1196_vm11, %v1192_v44, 1326507024  ;;  %v927_v10 = vor.u32 %v926_v35, %v925_v19  ;;  %v2192_v12 = vadd.s32 4294967294, %v1023_v52  ;;  %vm1194_vm14 = vcmp.lt.s32.totalorder %v1174_v22, 2 }
 0x5c4   : > { %v1203_v43 = vsel %vm1195_vm13, %v1186_v1, %v1202_v38  ;;  %v1197_v60 = vsel %vm1193_vm12, %v1177_v37, %v1180_v62  ;;  %v1199_v14 = vsel %vm1195_vm13, %v1183_v24, %v1198_v54  ;;  %v1207_v16 = vsel %vm1195_vm13, %v1189_v56, %v1206_v45 }
 0x5c5   : > { %v2202_v3 = vadd.s32 4294967169, %v1268_v23  ;;  %v932_v18 = vand.u32 2147483647, %v931_v49  ;;  %vm2193_vm15 = vcmp.lt.s32.totalorder %v2192_v12, 0  ;;  %v1204_v55 = vsel %vm1194_vm14, %v1201_v5, %v1203_v43 }
 0x5c6   : > { %v1208_v21 = vsel %vm1194_vm14, %v1205_v47, %v1207_v16  ;;  %v1026_v8 = vsel %vm2193_vm15, 0, %v2192_v12  ;;  %v934_v19 = vcvt.s32.f32 %v927_v10  ;;  %v1200_v62 = vsel %vm1194_vm14, %v1197_v60, %v1199_v14 }
 0x5c7   : > { %v3277_v26 = vmul.u32.u64.low %v3246_v59, %v1208_v21  ;;  %v3278_v28 = vmul.u32.u64.high %v3246_v59, %v1208_v21, %v3277_v26  ;;  %v1274_v29 = vadd.s32 1, %v2202_v3  ;;  %v1027_v33 = vsub.s32 32, %v1026_v8 }
 0x5c8   : > { %v1031_v35 = vsub.s32 4294967266, %v1026_v8  ;;  %v1028_v24 = vshll.u32 %v3260_v15, %v1026_v8  ;;  %v3283_v23 = vmul.u32.u64.low %v3246_v59, %v1204_v55  ;;  %v3284_v1 = vmul.u32.u64.high %v3246_v59, %v1204_v55, %v3283_v23 }
 0x5c9   : > { %vm1275_vm0 = vcmp.gt.s32.totalorder %v1274_v29, 0  ;;  %v1029_v63 = vshrl.u32 %v3242_v61, %v1027_v33  ;;  %v1370_v56 = vand.u32 2139095040, %v3237_v39  ;;  %v3289_v44 = vmul.f32 %v934_v19, %v932_v18 }
 0x5ca   : > { %v1032_v37 = vadd.s32 127, %v1031_v35  ;;  %v1276_v49 = vsel %vm1275_vm0, %v1274_v29, 0  ;;  %v1216_v52 = vmul.u32 %v3246_v59, %v1200_v62  ;;  %v1272_v22 = vor.u32 8388608, %v3251_v7 }
 0x5cb   : > { %v1278_v54 = vand.u32 31, %v1276_v49  ;;  %v1030_v15 = vor.u32 %v1029_v63, %v1028_v24  ;;  %vm1218_vm1 = vc.u32 %v3278_v28, %v3283_v23  ;;  %v1277_v38 = vshrl.u32 %v1276_v49, 5 }
 0x5cc   : > { %v1033_v5 = vshll.u32 %v1032_v37, 23  ;;  %v1219_v47 = vadd.s32 1, %v3284_v1  ;;  %v1371_v10 = vshrl.u32 %v1370_v56, 23  ;;  %vm957_vm3 = vcmp.lt.s32.totalorder %v3092_v41, 0 }
 0x5cd   : > { %v1279_v61 = vsub.s32 32, %v1278_v54  ;;  %v1281_v45 = vshll.u32 %v2757_v4, %v1278_v54  ;;  %v1037_v43 = vcvt.s32.f32 %v1030_v15  ;;  %v1284_v60 = vshll.u32 %v2758_v6, %v1278_v54 }
 0x5ce   : > { %v1034_v12 = vor.u32 4788187, %v1033_v5  ;;  %v1287_v59 = vshll.u32 %v2759_v9, %v1278_v54  ;;  %v1220_v7 = vsel %vm1218_vm1, %v1219_v47, %v3284_v1  ;;  %v1290_v3 = vshll.u32 %v2760_v11, %v1278_v54 }
 0x5cf   : > { %v1282_v14 = vshrl.u32 %v2758_v6, %v1279_v61  ;;  %v1285_v16 = vshrl.u32 %v2759_v9, %v1279_v61  ;;  %v1221_v55 = vadd.s32 %v1220_v7, %v1216_v52  ;;  %v1288_v21 = vshrl.u32 %v2760_v11, %v1279_v61 }
 0x5d0   : > { %v1035_v18 = vand.u32 2147483647, %v1034_v12  ;;  %v1291_v8 = vshrl.u32 %v2761_v13, %v1279_v61  ;;  %v1293_v19 = vshll.u32 %v2761_v13, %v1278_v54  ;;  %v1294_v33 = vshrl.u32 %v2762_v20, %v1279_v61 }
 0x5d1   : > { %v1283_v26 = vor.u32 %v1282_v14, %v1281_v45  ;;  %v1286_v29 = vor.u32 %v1285_v16, %v1284_v60  ;;  %vm1060_vm4 = vcmp.lt.s32.totalorder %v3078_v30, 0  ;;  %vm854_vm5 = vcmp.lt.s32.totalorder %v3081_v31, 0  ;;  %v836_v45 = vpop.permute.xlu1 %835 }
 0x5d2   : > { %v1038_v35 = vmul.f32 %v1037_v43, %v1035_v18  ;;  %v1222_v62 = vadd.s32 536870912, %v1221_v55  ;;  %v1289_v24 = vor.u32 %v1288_v21, %v1287_v59  ;;  %v1292_v1 = vor.u32 %v1291_v8, %v1290_v3  ;;  %v1676_v8 = vld [vmem:[#allocation5] sm:$0xff] }
 0x5d3   : > { %vm3312_vm6 = vcmp.le.f32.partialorder %v955_v51, 0.7853982  ;;  %v1280_v37 = vshrl.u32 %v2757_v4, %v1279_v61  ;;  %v1295_v49 = vor.u32 %v1294_v33, %v1293_v19  ;;  %vm1296_vm7 = vcmp.lt.s32.totalorder %v1277_v38, 1 }
 0x5d4   : > { %vm1297_vm8 = vcmp.lt.s32.totalorder %v1277_v38, 2  ;;  %v1039_v56 = vxor.u32 2147483648, %v1038_v35  ;;  %v3317_v52 = vshrl.u32 %v1222_v62, 30  ;;  %vm1298_vm9 = vcmp.lt.s32.totalorder %v1277_v38, 3 }
 0x5d5   : > { %vm1299_vm10 = vcmp.lt.s32.totalorder %v1277_v38, 4  ;;  %v1300_v54 = vsel %vm1296_vm7, %v1280_v37, %v1283_v26  ;;  %v1304_v5 = vsel %vm1296_vm7, %v1283_v26, %v1286_v29  ;;  %v1308_v61 = vsel %vm1296_vm7, %v1286_v29, %v1289_v24  ;;  %v1677_v26 = vld [vmem:[#allocation5 + $0x8] sm:$0xff] }
 0x5d6   : > { %v1301_v15 = vsel %vm1299_vm10, %v1289_v24, 2102212464  ;;  %v1305_v47 = vsel %vm1299_vm10, %v1292_v1, 920167782  ;;  %v1224_v51 = vshll.u32 %v3317_v52, 30  ;;  %v936_v60 = vxor.u32 2147483648, %v3289_v44 }
 0x5d7   : > { %v1302_v12 = vsel %vm1298_vm9, %v1286_v29, %v1301_v15  ;;  %v1306_v43 = vsel %vm1298_vm9, %v1289_v24, %v1305_v47  ;;  %v1309_v7 = vsel %vm1299_vm10, %v1295_v49, 1326507024  ;;  %v1312_v14 = vshll.u32 %v1272_v22, 8  ;;  %v1678_v22 = vld [vmem:[#allocation5 + $0x10] sm:$0xff]  ;;  %v1679_v24 = vld [vmem:[#allocation5 + $0x18] sm:$0xff] }
 0x5d8   : > { %v1307_v59 = vsel %vm1297_vm8, %v1304_v5, %v1306_v43  ;;  %v1040_v16 = vsel %vm957_vm3, %v1039_v56, %v1038_v35  ;;  %v3326_v3 = vsub.s32 %v1221_v55, %v1224_v51  ;;  %v1310_v18 = vsel %vm1298_vm9, %v1292_v1, %v1309_v7  ;;  %v1681_v51 = vld [vmem:[#allocation5 + $0x28] sm:$0xff] }
 0x5d9   : > { %v1374_v21 = vand.u32 8388607, %v3835_v57  ;;  %v1303_v29 = vsel %vm1297_vm8, %v1300_v54, %v1302_v12  ;;  %v1311_v19 = vsel %vm1297_vm8, %v1308_v61, %v1310_v18  ;;  %v2206_v1 = vadd.s32 4294967169, %v1371_v10  ;;  %v843_v54 = vpop.permute.xlu1 %842 }
 0x5da   : > { %v3333_v33 = vmul.u32.u64.low %v1312_v14, %v1307_v59  ;;  %v3334_v62 = vmul.u32.u64.high %v1312_v14, %v1307_v59, %v3333_v33  ;;  %v1227_v55 = vsub.s32 0, %v3326_v3  ;;  %v3346_v49 = vsel %vm1060_vm4, %v1142_v48, %v3255_v58  ;;  %v1680_v48 = vld [vmem:[#allocation5 + $0x20] sm:$0xff] }
 0x5db   : > { %v3338_v35 = vmul.u32.u64.low %v1312_v14, %v1311_v19  ;;  %v3339_v37 = vmul.u32.u64.high %v1312_v14, %v1311_v19, %v3338_v35  ;;  %v3351_v38 = vsel %vm854_vm5, %v936_v60, %v3289_v44  ;;  %v3354_v56 = vmul.f32 %v836_v45, %v3075_v27 }
 0x5dc   : > { %v2414_v15 = vpack.c.bf16 %v1677_v26, %v1676_v8  ;;  %v3359_v10 = vsel %vm3312_vm6, %v3092_v41, %v1040_v16  ;;  %v2199_v5 = vmin.u32 %v1227_v55, %v3326_v3  ;;  %v1377_v47 = vadd.s32 1, %v2206_v1 }
 0x5dd   : > { %v2418_v58 = vpack.c.bf16 %v1679_v24, %v1678_v22  ;;  %v1319_v12 = vmul.u32 %v1312_v14, %v1303_v29  ;;  %v1322_v44 = vadd.s32 1, %v3334_v62  ;;  %v1375_v43 = vor.u32 8388608, %v1374_v21 }
 0x5de   : > { %v3834_v45 = vand.u32 2147483647, %v3354_v56  ;;  %2415 = vmatprep.subr.bf16.mxu1 %v2414_v15  ;;  %v1229_v61 = vclz %v2199_v5  ;;  %vm1321_vm11 = vc.u32 %v3339_v37, %v3333_v33  ;;  %vm1378_vm12 = vcmp.gt.s32.totalorder %v1377_v47, 0 }
 0x5df   : > { %v3367_v60 = vmul.f32 %v843_v54, %v3075_v27  ;;  %2417 = vmatpush3.bf16.msra.mxu1 %v2414_v15  ;;  %v1323_v59 = vsel %vm1321_vm11, %v1322_v44, %v3334_v62  ;;  %v1379_v7 = vsel %vm1378_vm12, %v1377_v47, 0  ;;  %v1473_v14 = vand.u32 2139095040, %v3354_v56 }
 0x5e0   : > { %2419 = vmatprep.subr.bf16.mxu1 %v2418_v58  ;;  %v2422_v16 = vpack.c.bf16 %v1681_v51, %v1680_v48  ;;  %v1217_v18 = vadd.s32 %v3283_v23, %v3278_v28  ;;  %v2200_v21 = vadd.s32 4294967294, %v1229_v61  ;;  %v1324_v8 = vadd.s32 %v1323_v59, %v1319_v12 }
 0x5e1   : > { %v1381_v26 = vand.u32 31, %v1379_v7  ;;  %2560 = vcosq.f32 %v3359_v10  ;;  %v3374_v29 = vshrl.u32 %v1379_v7, 5  ;;  %v3376_v27 = vshll.u32 %v1375_v43, 8 }
 0x5e2   : > { %v3380_v19 = vand.u32 8388607, %v3834_v45  ;;  %vm2201_vm13 = vcmp.lt.s32.totalorder %v2200_v21, 0  ;;  %v1325_v62 = vadd.s32 536870912, %v1324_v8  ;;  %v3382_v24 = vshrl.u32 %v1473_v14, 23 }
 0x5e3   : > { %v1382_v22 = vsub.s32 32, %v1381_v26  ;;  %2421 = vmatpush3.bf16.msra.mxu1 %v2418_v58  ;;  %v1232_v28 = vsel %vm2201_vm13, 0, %v2200_v21  ;;  %v1384_v23 = vshll.u32 %v2757_v4, %v1381_v26  ;;  %v1387_v55 = vshll.u32 %v2758_v6, %v1381_v26 }
 0x5e4   : > { %v3836_v35 = vand.u32 2147483647, %v3367_v60  ;;  %2423 = vmatprep.subr.bf16.mxu1 %v2422_v16  ;;  %v1233_v1 = vsub.s32 32, %v1232_v28  ;;  %v1237_v54 = vsub.s32 4294967266, %v1232_v28  ;;  %v3387_v15 = vshrl.u32 %v1325_v62, 30 }
 0x5e5   : > { %v1390_v5 = vshll.u32 %v2759_v9, %v1381_v26  ;;  %v1385_v47 = vshrl.u32 %v2758_v6, %v1382_v22  ;;  %v1388_v48 = vshrl.u32 %v2759_v9, %v1382_v22  ;;  %v1391_v58 = vshrl.u32 %v2760_v11, %v1382_v22 }
 0x5e6   : > { %v1393_v51 = vshll.u32 %v2760_v11, %v1381_v26  ;;  %v1235_v12 = vshrl.u32 %v1217_v18, %v1233_v1  ;;  %v1238_v44 = vadd.s32 127, %v1237_v54  ;;  %v1327_v43 = vshll.u32 %v3387_v15, 30 }
 0x5e7   : > { %v1394_v61 = vshrl.u32 %v2761_v13, %v1382_v22  ;;  %2425 = vmatpush3.bf16.msra.mxu1 %v2422_v16  ;;  %v1234_v59 = vshll.u32 %v3326_v3, %v1232_v28  ;;  %v1386_v7 = vor.u32 %v1385_v47, %v1384_v23  ;;  %v1389_v14 = vor.u32 %v1388_v48, %v1387_v55 }
 0x5e8   : > { %v1392_v21 = vor.u32 %v1391_v58, %v1390_v5  ;;  %v1239_v62 = vshll.u32 %v1238_v44, 23  ;;  %v3397_v42 = vsub.s32 %v1324_v8, %v1327_v43  ;;  %v1383_v0 = vshrl.u32 %v2757_v4, %v1382_v22 }
 0x5e9   : > { %v1395_v45 = vor.u32 %v1394_v61, %v1393_v51  ;;  %v1236_v57 = vor.u32 %v1235_v12, %v1234_v59  ;;  %v1396_v18 = vshll.u32 %v2761_v13, %v1381_v26  ;;  %v1397_v1 = vshrl.u32 %v2762_v20, %v1382_v22 }
 0x5ea   : > { %vm1399_vm14 = vcmp.lt.s32.totalorder %v3374_v29, 1  ;;  %v1240_v54 = vor.u32 4788187, %v1239_v62  ;;  %v1330_v16 = vsub.s32 0, %v3397_v42  ;;  %vm1401_vm15 = vcmp.lt.s32.totalorder %v3374_v29, 3 }
 0x5eb   : > { %vm1402_vm0 = vcmp.lt.s32.totalorder %v3374_v29, 4  ;;  %v3406_v3 = vpop.eup %2560  ;;  %v1398_v8 = vor.u32 %v1397_v1, %v1396_v18  ;;  %v1403_v28 = vsel %vm1399_vm14, %v1383_v0, %v1386_v7  ;;  %v1407_v26 = vsel %vm1399_vm14, %v1386_v7, %v1389_v14  ;;  %v1682_v18 = vld [vmem:[#allocation5 + $0x30] sm:$0xff]  ;;  %v1683_v1 = vld [vmem:[#allocation5 + $0x38] sm:$0xff] }
 0x5ec   : > { %v1404_v23 = vsel %vm1402_vm0, %v1392_v21, 2102212464  ;;  %v1241_v22 = vand.u32 2147483647, %v1240_v54  ;;  %v2203_v55 = vmin.u32 %v1330_v16, %v3397_v42  ;;  %v1408_v47 = vsel %vm1402_vm0, %v1395_v45, 920167782 }
 0x5ed   : > { %v1405_v5 = vsel %vm1401_vm15, %v1389_v14, %v1404_v23  ;;  %vm1400_vm1 = vcmp.lt.s32.totalorder %v3374_v29, 2  ;;  %v1409_v48 = vsel %vm1401_vm15, %v1392_v21, %v1408_v47  ;;  %v1411_v58 = vsel %vm1399_vm14, %v1389_v14, %v1392_v21 }
 0x5ee   : > { %v1412_v0 = vsel %vm1402_vm0, %v1398_v8, 1326507024  ;;  %v1243_v51 = vcvt.s32.f32 %v1236_v57  ;;  %v1332_v12 = vclz %v2203_v55  ;;  %v1410_v44 = vsel %vm1400_vm1, %v1407_v26, %v1409_v48 }
 0x5ef   : > { %v1413_v43 = vsel %vm1401_vm15, %v1395_v45, %v1412_v0  ;;  %vm1163_vm7 = vcmp.lt.s32.totalorder %v3107_v2, 0  ;;  %v1406_v61 = vsel %vm1400_vm1, %v1403_v28, %v1405_v5  ;;  %2562 = vsinq.f32 %v3359_v10 }
 0x5f0   : > { %v1414_v59 = vsel %vm1400_vm1, %v1411_v58, %v1413_v43  ;;  %v3424_v7 = vmul.u32.u64.low %v3376_v27, %v1410_v44  ;;  %v3425_v62 = vmul.u32.u64.high %v3376_v27, %v1410_v44, %v3424_v7  ;;  %v1244_v54 = vmul.f32 %v1243_v51, %v1241_v22 }
 0x5f1   : > { %v2204_v14 = vadd.s32 4294967294, %v1332_v12  ;;  %v3429_v57 = vmul.u32.u64.low %v3376_v27, %v1414_v59  ;;  %v3430_v21 = vmul.u32.u64.high %v3376_v27, %v1414_v59, %v3429_v57  ;;  %v1320_v45 = vadd.s32 %v3333_v33, %v3339_v37 }
 0x5f2   : > { %v2210_v29 = vadd.s32 4294967169, %v3382_v24  ;;  %v1576_v16 = vand.u32 2139095040, %v3367_v60  ;;  %v1422_v8 = vmul.u32 %v3376_v27, %v1406_v61  ;;  %v1478_v28 = vor.u32 8388608, %v3380_v19 }
 0x5f3   : > { %vm2205_vm8 = vcmp.lt.s32.totalorder %v2204_v14, 0  ;;  %v2426_v23 = vpack.c.bf16 %v1683_v1, %v1682_v18  ;;  %v1425_v22 = vadd.s32 1, %v3425_v62  ;;  %v1245_v47 = vxor.u32 2147483648, %v1244_v54 }
 0x5f4   : > { %v1335_v26 = vsel %vm2205_vm8, 0, %v2204_v14  ;;  %v1480_v55 = vadd.s32 1, %v2210_v29  ;;  %v1577_v5 = vshrl.u32 %v1576_v16, 23  ;;  %v3442_v33 = vand.u32 8388607, %v3836_v35 }
 0x5f5   : > { %v1336_v10 = vsub.s32 32, %v1335_v26  ;;  %v1340_v48 = vsub.s32 4294967266, %v1335_v26  ;;  %2427 = vmatprep.subr.bf16.mxu1 %v2426_v23  ;;  %vm1424_vm9 = vc.u32 %v3430_v21, %v3424_v7  ;;  %v938_v27 = vsub.s32 4, %v3206_v25 }
 0x5f6   : > { %vm1481_vm10 = vcmp.gt.s32.totalorder %v1480_v55, 0  ;;  %v2214_v37 = vadd.s32 4294967169, %v1577_v5  ;;  %2429 = vmatpush3.bf16.msra.mxu1 %v2426_v23  ;;  %v1426_v58 = vsel %vm1424_vm9, %v1425_v22, %v3425_v62  ;;  %v1337_v51 = vshll.u32 %v3397_v42, %v1335_v26 }
 0x5f7   : > { %v1338_v19 = vshrl.u32 %v1320_v45, %v1336_v10  ;;  %v1341_v24 = vadd.s32 127, %v1340_v48  ;;  %v1482_v0 = vsel %vm1481_vm10, %v1480_v55, 0  ;;  %v1427_v12 = vadd.s32 %v1426_v58, %v1422_v8 }
 0x5f8   : > { %v1484_v44 = vand.u32 31, %v1482_v0  ;;  %v3449_v43 = vshll.u32 %v1478_v28, 8  ;;  %v3453_v61 = vsel %vm1163_vm7, %v1245_v47, %v1244_v54  ;;  %v1483_v18 = vshrl.u32 %v1482_v0, 5 }
 0x5f9   : > { %v1342_v59 = vshll.u32 %v1341_v24, 23  ;;  %v1581_v1 = vor.u32 8388608, %v3442_v33  ;;  %v1339_v14 = vor.u32 %v1338_v19, %v1337_v51  ;;  %v1428_v57 = vadd.s32 536870912, %v1427_v12  ;;  %v3463_v54 = vpop.eup %2562 }
 0x5fa   : > { %v1485_v45 = vsub.s32 32, %v1484_v44  ;;  %v1583_v29 = vadd.s32 1, %v2214_v37  ;;  %v1487_v16 = vshll.u32 %v2757_v4, %v1484_v44  ;;  %v1490_v42 = vshll.u32 %v2758_v6, %v1484_v44 }
 0x5fb   : > { %v1343_v62 = vor.u32 4788187, %v1342_v59  ;;  %v3461_v8 = vsel %vm854_vm5, %v938_v27, %v3206_v25  ;;  %v3465_v28 = vshrl.u32 %v1428_v57, 30  ;;  %v1493_v22 = vshll.u32 %v2759_v9, %v1484_v44 }
 0x5fc   : > { %v1488_v23 = vshrl.u32 %v2758_v6, %v1485_v45  ;;  %v1491_v26 = vshrl.u32 %v2759_v9, %v1485_v45  ;;  %v1494_v55 = vshrl.u32 %v2760_v11, %v1485_v45  ;;  %v1496_v5 = vshll.u32 %v2760_v11, %v1484_v44 }
 0x5fd   : > { %v1497_v47 = vshrl.u32 %v2761_v13, %v1485_v45  ;;  %v1499_v10 = vshll.u32 %v2761_v13, %v1484_v44  ;;  %v1430_v25 = vshll.u32 %v3465_v28, 30  ;;  %v1500_v37 = vshrl.u32 %v2762_v20, %v1485_v45 }
 0x5fe   : > { %v1489_v48 = vor.u32 %v1488_v23, %v1487_v16  ;;  %v1492_v33 = vor.u32 %v1491_v26, %v1490_v42  ;;  %vm3478_vm5 = vcmp.le.f32.partialorder %v852_v34, 0.7853982  ;;  %v1346_v19 = vcvt.s32.f32 %v1339_v14 }
 0x5ff   : > { %v1486_v24 = vshrl.u32 %v2757_v4, %v1485_v45  ;;  %v1495_v58 = vor.u32 %v1494_v55, %v1493_v22  ;;  %v1498_v0 = vor.u32 %v1497_v47, %v1496_v5  ;;  %v1344_v51 = vand.u32 2147483647, %v1343_v62 }
 0x600   : > { %v3483_v59 = vsub.s32 %v1427_v12, %v1430_v25  ;;  %v1501_v44 = vor.u32 %v1500_v37, %v1499_v10  ;;  %vm1502_vm11 = vcmp.lt.s32.totalorder %v1483_v18, 1  ;;  %vm1504_vm12 = vcmp.lt.s32.totalorder %v1483_v18, 3 }
 0x601   : > { %vm1505_vm13 = vcmp.lt.s32.totalorder %v1483_v18, 4  ;;  %v1506_v57 = vsel %vm1502_vm11, %v1486_v24, %v1489_v48  ;;  %v1510_v16 = vsel %vm1502_vm11, %v1489_v48, %v1492_v33  ;;  %v1514_v26 = vsel %vm1502_vm11, %v1492_v33, %v1495_v58 }
 0x602   : > { %v1433_v42 = vsub.s32 0, %v3483_v59  ;;  %v1507_v34 = vsel %vm1505_vm13, %v1495_v58, 2102212464  ;;  %v1511_v23 = vsel %vm1505_vm13, %v1498_v0, 920167782  ;;  %vm1503_vm14 = vcmp.lt.s32.totalorder %v1483_v18, 2 }
 0x603   : > { %v1508_v14 = vsel %vm1504_vm12, %v1492_v33, %v1507_v34  ;;  %v1512_v35 = vsel %vm1504_vm12, %v1495_v58, %v1511_v23  ;;  %v1515_v45 = vsel %vm1505_vm13, %v1501_v44, 1326507024  ;;  %v3486_v22 = vmul.f32 %v1346_v19, %v1344_v51 }
 0x604   : > { %v2207_v12 = vmin.u32 %v1433_v42, %v3483_v59  ;;  %v1513_v62 = vsel %vm1503_vm14, %v1510_v16, %v1512_v35  ;;  %v1516_v55 = vsel %vm1504_vm12, %v1498_v0, %v1515_v45  ;;  %v1509_v5 = vsel %vm1503_vm14, %v1506_v57, %v1508_v14 }
 0x605   : > { %v1517_v47 = vsel %vm1503_vm14, %v1514_v26, %v1516_v55  ;;  %v3490_v10 = vmul.u32.u64.low %v3449_v43, %v1513_v62  ;;  %v3491_v25 = vmul.u32.u64.high %v3449_v43, %v1513_v62, %v3490_v10  ;;  %vm1584_vm15 = vcmp.gt.s32.totalorder %v1583_v29, 0 }
 0x606   : > { %v1435_v48 = vclz %v2207_v12  ;;  %v3495_v37 = vmul.u32.u64.low %v3449_v43, %v1517_v47  ;;  %v3496_v18 = vmul.u32.u64.high %v3449_v43, %v1517_v47, %v3495_v37  ;;  %v1423_v33 = vadd.s32 %v3424_v7, %v3430_v21 }
 0x607   : > { %v1585_v19 = vsel %vm1584_vm15, %v1583_v29, 0  ;;  %v3500_v24 = vshll.u32 %v1581_v1, 8  ;;  %v940_v35 = vsel %vm3478_vm5, %v3081_v31, %v3351_v38  ;;  %v1348_v58 = vxor.u32 2147483648, %v3486_v22 }
 0x608   : > { %v2208_v0 = vadd.s32 4294967294, %v1435_v48  ;;  %v1587_v51 = vand.u32 31, %v1585_v19  ;;  %v941_v44 = vsel %vm3478_vm5, 0, %v3461_v8  ;;  %v1525_v57 = vmul.u32 %v3449_v43, %v1509_v5 }
 0x609   : > { %v1528_v7 = vadd.s32 1, %v3491_v25  ;;  %v3512_v21 = vshrl.u32 %v1585_v19, 5  ;;  %v1041_v1 = vsub.s32 4, %v3244_v53  ;;  %vm1527_vm1 = vc.u32 %v3496_v18, %v3490_v10 }
 0x60a   : > { %vm2209_vm0 = vcmp.lt.s32.totalorder %v2208_v0, 0  ;;  %v1588_v38 = vsub.s32 32, %v1587_v51  ;;  %2564 = vcosq.f32 %v940_v35  ;;  %v3518_v27 = vand.u32 3, %v941_v44 }
 0x60b   : > { %v1438_v29 = vsel %vm2209_vm0, 0, %v2208_v0  ;;  %v1529_v16 = vsel %vm1527_vm1, %v1528_v7, %v3491_v25  ;;  %2566 = vsinq.f32 %v940_v35  ;;  %v1590_v34 = vshll.u32 %v2757_v4, %v1587_v51 }
 0x60c   : > { %v1439_v8 = vsub.s32 32, %v1438_v29  ;;  %v1443_v43 = vsub.s32 4294967266, %v1438_v29  ;;  %v1530_v42 = vadd.s32 %v1529_v16, %v1525_v57  ;;  %v1591_v23 = vshrl.u32 %v2758_v6, %v1588_v38 }
 0x60d   : > { %v1593_v26 = vshll.u32 %v2758_v6, %v1587_v51  ;;  %v1594_v14 = vshrl.u32 %v2759_v9, %v1588_v38  ;;  %v1596_v45 = vshll.u32 %v2759_v9, %v1587_v51  ;;  %v1597_v5 = vshrl.u32 %v2760_v11, %v1588_v38 }
 0x60e   : > { %v1441_v12 = vshrl.u32 %v1423_v33, %v1439_v8  ;;  %v1444_v62 = vadd.s32 127, %v1443_v43  ;;  %v1531_v55 = vadd.s32 536870912, %v1530_v42  ;;  %v1440_v47 = vshll.u32 %v3483_v59, %v1438_v29 }
 0x60f   : > { %v1592_v25 = vor.u32 %v1591_v23, %v1590_v34  ;;  %v1599_v48 = vshll.u32 %v2760_v11, %v1587_v51  ;;  %v1600_v37 = vshrl.u32 %v2761_v13, %v1588_v38  ;;  %v1595_v6 = vor.u32 %v1594_v14, %v1593_v26 }
 0x610   : > { %v1445_v19 = vshll.u32 %v1444_v62, 23  ;;  %v3529_v35 = vshrl.u32 %v1531_v55, 30  ;;  %v1598_v0 = vor.u32 %v1597_v5, %v1596_v45  ;;  %v1589_v44 = vshrl.u32 %v2757_v4, %v1588_v38 }
 0x611   : > { %v1601_v9 = vor.u32 %v1600_v37, %v1599_v48  ;;  %v1602_v33 = vshll.u32 %v2761_v13, %v1587_v51  ;;  %v1603_v57 = vshrl.u32 %v2762_v20, %v1588_v38  ;;  %v1442_v7 = vor.u32 %v1441_v12, %v1440_v47 }
 0x612   : > { %v1446_v16 = vor.u32 4788187, %v1445_v19  ;;  %v1533_v59 = vshll.u32 %v3529_v35, 30  ;;  %vm1605_vm8 = vcmp.lt.s32.totalorder %v3512_v21, 1  ;;  %vm1607_vm9 = vcmp.lt.s32.totalorder %v3512_v21, 3 }
 0x613   : > { %v1604_v11 = vor.u32 %v1603_v57, %v1602_v33  ;;  %vm1608_vm10 = vcmp.lt.s32.totalorder %v3512_v21, 4  ;;  %v1609_v29 = vsel %vm1605_vm8, %v1589_v44, %v1592_v25  ;;  %v1613_v13 = vsel %vm1605_vm8, %v1592_v25, %v1595_v6 }
 0x614   : > { %v2565_v8 = vpop.eup %2564  ;;  %v1447_v43 = vand.u32 2147483647, %v1446_v16  ;;  %v3538_v4 = vsub.s32 %v1530_v42, %v1533_v59  ;;  %v1610_v34 = vsel %vm1608_vm10, %v1598_v0, 2102212464  ;;  %v1614_v38 = vsel %vm1608_vm10, %v1601_v9, 920167782 }
 0x615   : > { %v2567_v51 = vpop.eup %2566  ;;  %v1611_v20 = vsel %vm1607_vm9, %v1595_v6, %v1610_v34  ;;  %v1617_v23 = vsel %vm1605_vm8, %v1595_v6, %v1598_v0  ;;  %v1618_v26 = vsel %vm1608_vm10, %v1604_v11, 1326507024  ;;  %v1449_v14 = vcvt.s32.f32 %v1442_v7 }
 0x616   : > { %v1536_v45 = vsub.s32 0, %v3538_v4  ;;  %vm1606_vm5 = vcmp.lt.s32.totalorder %v3512_v21, 2  ;;  %v1615_v12 = vsel %vm1607_vm9, %v1598_v0, %v1614_v38  ;;  %vm944_vm11 = vweird.f32 %v3081_v31 }
 0x617   : > { %v1612_v42 = vsel %vm1606_vm5, %v1609_v29, %v1611_v20  ;;  %v1616_v62 = vsel %vm1606_vm5, %v1613_v13, %v1615_v12  ;;  %v1619_v55 = vsel %vm1607_vm9, %v1601_v9, %v1618_v26  ;;  %v1042_v5 = vsel %vm957_vm3, %v1041_v1, %v3244_v53 }
 0x618   : > { %v3552_v47 = vmul.f32 %v1449_v14, %v1447_v43  ;;  %v1526_v25 = vadd.s32 %v3490_v10, %v3496_v18  ;;  %v2211_v48 = vmin.u32 %v1536_v45, %v3538_v4  ;;  %v1620_v37 = vsel %vm1606_vm5, %v1617_v23, %v1619_v55 }
 0x619   : > { %vm3559_vm12 = vcmp.le.f32.partialorder %v1058_v32, 0.7853982  ;;  %v3564_v21 = vmul.u32.u64.low %v3500_v24, %v1620_v37  ;;  %v3565_v6 = vmul.u32.u64.high %v3500_v24, %v1620_v37, %v3564_v21  ;;  %v1628_v10 = vmul.u32 %v3500_v24, %v1612_v42 }
 0x61a   : > { %v3568_v53 = vmul.u32.u64.low %v3500_v24, %v1616_v62  ;;  %v3569_v1 = vmul.u32.u64.high %v3500_v24, %v1616_v62, %v3568_v53  ;;  %v1538_v0 = vclz %v2211_v48  ;;  %vm946_vm3 = vcmp.lt.s32.totalorder %v3518_v27, 2 }
 0x61b   : > { %v948_v18 = vxor.u32 2147483648, %v2567_v51  ;;  %vm947_vm13 = vcmp.eq.s32.totalorder %v3518_v27, 0  ;;  %vm950_vm14 = vcmp.eq.s32.totalorder %v3518_v27, 2  ;;  %v951_v32 = vxor.u32 2147483648, %v2565_v8 }
 0x61c   : > { %v1044_v44 = vsel %vm3312_vm6, 0, %v1042_v5  ;;  %vm1047_vm15 = vweird.f32 %v3092_v41  ;;  %v2212_v9 = vadd.s32 4294967294, %v1538_v0  ;;  %v1051_v7 = vxor.u32 2147483648, %v3463_v54 }
 0x61d   : > { %v949_v33 = vsel %vm947_vm13, %v2565_v8, %v948_v18  ;;  %v1048_v57 = vand.u32 3, %v1044_v44  ;;  %vm1630_vm0 = vc.u32 %v3565_v6, %v3568_v53  ;;  %v1631_v24 = vadd.s32 1, %v3569_v1 }
 0x61e   : > { %v952_v16 = vsel %vm950_vm14, %v951_v32, %v2567_v51  ;;  %v1144_v59 = vsub.s32 4, %v3176_v46  ;;  %vm2213_vm1 = vcmp.lt.s32.totalorder %v2212_v9, 0  ;;  %v1054_v11 = vxor.u32 2147483648, %v3406_v3 }
 0x61f   : > { %v953_v63 = vsel %vm946_vm3, %v949_v33, %v952_v16  ;;  %vm1049_vm6 = vcmp.lt.s32.totalorder %v1048_v57, 2  ;;  %v1541_v29 = vsel %vm2213_vm1, 0, %v2212_v9  ;;  %v1632_v8 = vsel %vm1630_vm0, %v1631_v24, %v3569_v1 }
 0x620   : > { %v954_v43 = vsel %vm944_vm11, nan, %v953_v63  ;;  %vm1050_vm8 = vcmp.eq.s32.totalorder %v1048_v57, 0  ;;  %v1542_v34 = vsub.s32 32, %v1541_v29  ;;  %v1546_v13 = vsub.s32 4294967266, %v1541_v29 }
 0x621   : > { %v1633_v20 = vadd.s32 %v1632_v8, %v1628_v10  ;;  %2353 = vmatprep.mubr.msk.f32.mxu1 %vm528_vm2, %v954_v43  ;;  %v1052_v51 = vsel %vm1050_vm8, %v3406_v3, %v1051_v7  ;;  %v1543_v27 = vshll.u32 %v3538_v4, %v1541_v29  ;;  %vm1053_vm9 = vcmp.eq.s32.totalorder %v1048_v57, 2 }
 0x622   : > { %v1145_v38 = vsel %vm1060_vm4, %v1144_v59, %v3176_v46  ;;  %v1146_v31 = vsel %vm3559_vm12, %v3078_v30, %v3346_v49  ;;  %v1544_v23 = vshrl.u32 %v1526_v25, %v1542_v34  ;;  %v1547_v26 = vadd.s32 127, %v1546_v13 }
 0x623   : > { %v1634_v14 = vadd.s32 536870912, %v1633_v20  ;;  %v1055_v45 = vsel %vm1053_vm9, %v1054_v11, %v3463_v54  ;;  %2568 = vcosq.f32 %v1146_v31  ;;  %vm3604_vm10 = vcmp.le.f32.partialorder %v1161_v50, 0.7853982 }
 0x624   : > { %v1056_v12 = vsel %vm1049_vm6, %v1052_v51, %v1055_v45  ;;  %v1247_v46 = vsub.s32 4, %v3317_v52  ;;  %v1545_v4 = vor.u32 %v1544_v23, %v1543_v27  ;;  %v1548_v42 = vshll.u32 %v1547_v26, 23 }
 0x625   : > { %v3609_v62 = vshrl.u32 %v1634_v14, 30  ;;  %v1057_v49 = vsel %vm1047_vm15, nan, %v1056_v12  ;;  %vm1266_vm4 = vcmp.lt.s32.totalorder %v3227_v17, 0  ;;  %2570 = vsinq.f32 %v1146_v31 }
 0x626   : > { %2354 = vmatmul.mubr.msk.f32.vlgmr.msra.gmra.mrb[2].mxu1 %vm528_vm2, %v1057_v49  ;;  %v1248_v50 = vsel %vm1163_vm7, %v1247_v46, %v3317_v52  ;;  %v1249_v54 = vsel %vm3604_vm10, %v3107_v2, %v3453_v61  ;;  %v1451_v55 = vxor.u32 2147483648, %v3552_v47  ;;  %v1549_v5 = vor.u32 4788187, %v1548_v42 }
 0x627   : > { %v1636_v41 = vshll.u32 %v3609_v62, 30  ;;  %v1147_v25 = vsel %vm3559_vm12, 0, %v1145_v38  ;;  %v1349_v48 = vsel %vm1266_vm4, %v1348_v58, %v3486_v22  ;;  %v1552_v52 = vcvt.s32.f32 %v1545_v4 }
 0x628   : > { %2572 = vcosq.f32 %v1249_v54  ;;  %v1550_v37 = vand.u32 2147483647, %v1549_v5  ;;  %v1250_v61 = vsel %vm3604_vm10, 0, %v1248_v50  ;;  %vm1369_vm7 = vcmp.lt.s32.totalorder %v3237_v39, 0 }
 0x629   : > { %v3631_v21 = vsub.s32 %v1633_v20, %v1636_v41  ;;  %2574 = vsinq.f32 %v1249_v54  ;;  %v1151_v1 = vand.u32 3, %v1147_v25  ;;  %vm3638_vm5 = vcmp.le.f32.partialorder %v1264_v36, 0.7853982 }
 0x62a   : > { %v1350_v22 = vsub.s32 4, %v3387_v15  ;;  %v1452_v58 = vsel %vm1369_vm7, %v1451_v55, %v3552_v47  ;;  %v1553_v0 = vmul.f32 %v1552_v52, %v1550_v37  ;;  %v1352_v18 = vsel %vm3638_vm5, %v3227_v17, %v1349_v48 }
 0x62b   : > { %v1639_v10 = vsub.s32 0, %v3631_v21  ;;  %vm1472_vm11 = vcmp.lt.s32.totalorder %v3354_v56, 0  ;;  %v1629_v36 = vadd.s32 %v3568_v53, %v3565_v6  ;;  %vm1150_vm12 = vweird.f32 %v3078_v30 }
 0x62c   : > { %v1254_v32 = vand.u32 3, %v1250_v61  ;;  %v1351_v44 = vsel %vm1266_vm4, %v1350_v22, %v3387_v15  ;;  %2576 = vcosq.f32 %v1352_v18  ;;  %v3864_v33 = vand.u32 2147483647, %v3237_v39 }
 0x62d   : > { %v2215_v47 = vmin.u32 %v1639_v10, %v3631_v21  ;;  %v1353_v9 = vsel %vm3638_vm5, 0, %v1351_v44  ;;  %v2569_v6 = vpop.eup %2568  ;;  %vm1152_vm13 = vcmp.lt.s32.totalorder %v1151_v1, 2  ;;  %2578 = vsinq.f32 %v1352_v18 }
 0x62e   : > { %vm3662_vm3 = vcmp.le.f32.partialorder %v3864_v33, 0.7853982  ;;  %v1453_v53 = vsub.s32 4, %v3465_v28  ;;  %v1554_v7 = vxor.u32 2147483648, %v1553_v0  ;;  %v1157_v16 = vxor.u32 2147483648, %v2569_v6 }
 0x62f   : > { %v1455_v15 = vsel %vm3662_vm3, %v3237_v39, %v1452_v58  ;;  %v1641_v24 = vclz %v2215_v47  ;;  %v2571_v59 = vpop.eup %2570  ;;  %vm1153_vm14 = vcmp.eq.s32.totalorder %v1151_v1, 0  ;;  %vm1156_vm15 = vcmp.eq.s32.totalorder %v1151_v1, 2 }
 0x630   : > { %2580 = vcosq.f32 %v1455_v15  ;;  %vm1253_vm0 = vweird.f32 %v3107_v2  ;;  %v1357_v63 = vand.u32 3, %v1353_v9  ;;  %v1154_v29 = vxor.u32 2147483648, %v2571_v59 }
 0x631   : > { %v2216_v11 = vadd.s32 4294967294, %v1641_v24  ;;  %v1158_v8 = vsel %vm1156_vm15, %v1157_v16, %v2571_v59  ;;  %vm1255_vm1 = vcmp.lt.s32.totalorder %v1254_v32, 2  ;;  %vm1256_vm6 = vcmp.eq.s32.totalorder %v1254_v32, 0 }
 0x632   : > { %v2573_v43 = vpop.eup %2572  ;;  %vm1259_vm8 = vcmp.eq.s32.totalorder %v1254_v32, 2  ;;  %v1454_v34 = vsel %vm1369_vm7, %v1453_v53, %v3465_v28  ;;  %2582 = vsinq.f32 %v1455_v15  ;;  %v1555_v20 = vsel %vm1472_vm11, %v1554_v7, %v1553_v0 }
 0x633   : > { %v2575_v13 = vpop.eup %2574  ;;  %vm2217_vm9 = vcmp.lt.s32.totalorder %v2216_v11, 0  ;;  %v1155_v51 = vsel %vm1153_vm14, %v2569_v6, %v1154_v29  ;;  %v1260_v27 = vxor.u32 2147483648, %v2573_v43  ;;  %vm1362_vm10 = vcmp.eq.s32.totalorder %v1357_v63, 2 }
 0x634   : > { %v1644_v38 = vsel %vm2217_vm9, 0, %v2216_v11  ;;  %v1159_v31 = vsel %vm1152_vm13, %v1155_v51, %v1158_v8  ;;  %v1257_v23 = vxor.u32 2147483648, %v2575_v13  ;;  %v1456_v28 = vsel %vm3662_vm3, 0, %v1454_v34 }
 0x635   : > { %v1645_v26 = vsub.s32 32, %v1644_v38  ;;  %v1649_v14 = vsub.s32 4294967266, %v1644_v38  ;;  %v1160_v45 = vsel %vm1150_vm12, nan, %v1159_v31  ;;  %v1261_v3 = vsel %vm1259_vm8, %v1260_v27, %v2575_v13 }
 0x636   : > { %2356 = vmatprep.mubr.msk.f32.mxu1 %vm528_vm2, %v1160_v45  ;;  %v1258_v12 = vsel %vm1256_vm6, %v2573_v43, %v1257_v23  ;;  %v3867_v46 = vand.u32 2147483647, %v3354_v56  ;;  %v1556_v42 = vsub.s32 4, %v3529_v35  ;;  %v2577_v49 = vpop.eup %2576  ;;  %v1646_v30 = vshll.u32 %v3631_v21, %v1644_v38 }
 0x637   : > { %v1647_v50 = vshrl.u32 %v1629_v36, %v1645_v26  ;;  %v1650_v54 = vadd.s32 127, %v1649_v14  ;;  %v1262_v55 = vsel %vm1255_vm1, %v1258_v12, %v1261_v3  ;;  %v2579_v5 = vpop.eup %2578  ;;  %v1363_v25 = vxor.u32 2147483648, %v2577_v49  ;;  %v1972_v12 = vld [vmem:[#allocation7] sm:$0xff]  ;;  %v1973_v3 = vld [vmem:[#allocation7 + $0x8] sm:$0xff] }
 0x638   : > { %vm3687_vm4 = vcmp.le.f32.partialorder %v3867_v46, 0.7853982  ;;  %v1263_v41 = vsel %vm1253_vm0, nan, %v1262_v55  ;;  %v1460_v48 = vand.u32 3, %v1456_v28  ;;  %v1360_v21 = vxor.u32 2147483648, %v2579_v5  ;;  %v1974_v46 = vld [vmem:[#allocation7 + $0x10] sm:$0xff] }
 0x639   : > { %v1558_v52 = vsel %vm3687_vm4, %v3354_v56, %v1555_v20  ;;  %v1648_v61 = vor.u32 %v1647_v50, %v1646_v30  ;;  %v1651_v1 = vshll.u32 %v1650_v54, 23  ;;  %2357 = vmatmul.mubr.msk.f32.gmra.mrb[4].mxu1 %vm528_vm2, %v1263_v41  ;;  %vm1359_vm7 = vcmp.eq.s32.totalorder %v1357_v63, 0  ;;  %v1976_v50 = vld [vmem:[#allocation7 + $0x20] sm:$0xff]  ;;  %v1977_v54 = vld [vmem:[#allocation7 + $0x28] sm:$0xff] }
 0x63a   : > { %v2581_v37 = vpop.eup %2580  ;;  %2584 = vcosq.f32 %v1558_v52  ;;  %v1364_v19 = vsel %vm1362_vm10, %v1363_v25, %v2579_v5  ;;  %vm1358_vm5 = vcmp.lt.s32.totalorder %v1357_v63, 2  ;;  %v1361_v58 = vsel %vm1359_vm7, %v2577_v49, %v1360_v21  ;;  %v1979_v5 = vld [vmem:[#allocation7 + $0x38] sm:$0xff]  ;;  %v3738_v25 = vld [vmem:[%s3817_s8] ss:$0 sm:$0xff]  ;;  %v1841_v21 = vpop.permute.xlu0 %1840 }
 0x63b   : > { %v1466_v22 = vxor.u32 2147483648, %v2581_v37  ;;  %2586 = vsinq.f32 %v1558_v52  ;;  %v1652_v2 = vor.u32 4788187, %v1651_v1  ;;  %v1557_v0 = vsel %vm1472_vm11, %v1556_v42, %v3529_v35  ;;  %v1975_v42 = vld [vmem:[#allocation7 + $0x18] sm:$0xff] }
 0x63c   : > { %v2583_v10 = vpop.eup %2582  ;;  %v1655_v18 = vcvt.s32.f32 %v1648_v61  ;;  %vm1356_vm12 = vweird.f32 %v3227_v17  ;;  %v1365_v36 = vsel %vm1358_vm5, %v1361_v58, %v1364_v19  ;;  %vm1465_vm3 = vcmp.eq.s32.totalorder %v1460_v48, 2 }
 0x63d   : > { %v1653_v32 = vand.u32 2147483647, %v1652_v2  ;;  %v1366_v44 = vsel %vm1356_vm12, nan, %v1365_v36  ;;  %v1463_v47 = vxor.u32 2147483648, %v2583_v10  ;;  %v1467_v9 = vsel %vm1465_vm3, %v1466_v22, %v2583_v10  ;;  %v1834_v22 = vpop.permute.xlu1 %1833 }
 0x63e   : > { %2359 = vmatprep.mubr.msk.f32.mxu1 %vm528_vm2, %v1366_v44  ;;  %vm1462_vm13 = vcmp.eq.s32.totalorder %v1460_v48, 0  ;;  %v1559_v33 = vsel %vm3687_vm4, 0, %v1557_v0  ;;  %vm1461_vm14 = vcmp.lt.s32.totalorder %v1460_v48, 2  ;;  %vm1459_vm11 = vweird.f32 %v3237_v39 }
 0x63f   : > { %v1656_v57 = vmul.f32 %v1655_v18, %v1653_v32  ;;  %v1464_v6 = vsel %vm1462_vm13, %v2581_v37, %v1463_v47  ;;  %v1563_v15 = vand.u32 3, %v1559_v33  ;;  %vm1575_vm15 = vcmp.lt.s32.totalorder %v3367_v60, 0 }
 0x640   : > { %v1468_v35 = vsel %vm1461_vm14, %v1464_v6, %v1467_v9  ;;  %v3870_v16 = vand.u32 2147483647, %v3367_v60  ;;  %v1659_v39 = vsub.s32 4, %v3609_v62  ;;  %vm1562_vm9 = vweird.f32 %v3354_v56 }
 0x641   : > { %v1657_v53 = vxor.u32 2147483648, %v1656_v57  ;;  %v1469_v17 = vsel %vm1459_vm11, nan, %v1468_v35  ;;  %vm1568_vm1 = vcmp.eq.s32.totalorder %v1563_v15, 2  ;;  %vm1565_vm6 = vcmp.eq.s32.totalorder %v1563_v15, 0 }
 0x642   : > { %2360 = vmatmul.mubr.msk.f32.gmra.mrb[6].mxu1 %vm528_vm2, %v1469_v17  ;;  %vm3715_vm0 = vcmp.le.f32.partialorder %v3870_v16, 0.7853982  ;;  %vm1564_vm8 = vcmp.lt.s32.totalorder %v1563_v15, 2  ;;  %v1660_v13 = vsel %vm1575_vm15, %v1659_v39, %v3609_v62  ;;  %vm1665_vm5 = vweird.f32 %v3367_v60 }
 0x643   : > { %v1658_v24 = vsel %vm1575_vm15, %v1657_v53, %v1656_v57  ;;  %v1662_v27 = vsel %vm3715_vm0, 0, %v1660_v13  ;;  %v2431_v4 = vpack.c.bf16 %v1973_v3, %v1972_v12  ;;  %v2434_v49 = vpack.c.bf16 %v1975_v42, %v1974_v46 }
 0x644   : > { %v2585_v7 = vpop.eup %2584  ;;  %v1661_v29 = vsel %vm3715_vm0, %v3367_v60, %v1658_v24  ;;  %v1666_v38 = vand.u32 3, %v1662_v27  ;;  %v3873_v30 = vmov 0.0|0.0   ;;  %v2437_v55 = vpack.c.bf16 %v1977_v54, %v1976_v50  ;;  %v1978_v60 = vld [vmem:[#allocation7 + $0x30] sm:$0xff] }
 0x645   : > { %v2587_v63 = vpop.eup %2586  ;;  %v1569_v11 = vxor.u32 2147483648, %v2585_v7  ;;  %2588 = vcosq.f32 %v1661_v29  ;;  %2432 = vmatpush3.bf16.msra.mxu0 %v2431_v4  ;;  %v2440_v41 = vpack.c.bf16 %v1979_v5, %v1978_v60  ;;  %vm1956_vm12 = vcmask 1041409  }
 0x646   : > { %v1566_v8 = vxor.u32 2147483648, %v2587_v63  ;;  %2590 = vsinq.f32 %v1661_v29  ;;  %vm1671_vm10 = vcmp.eq.s32.totalorder %v1666_v38, 2  ;;  %vm1668_vm4 = vcmp.eq.s32.totalorder %v1666_v38, 0  ;;  %2433 = vmatprep.subr.bf16.mxu0 %v3873_v30  ;;  %v1848_v29 = vpop.permute.xlu1 %1847 }
 0x647   : > { %v1570_v43 = vsel %vm1568_vm1, %v1569_v11, %v2587_v63  ;;  %vm1667_vm7 = vcmp.lt.s32.totalorder %v1666_v38, 2  ;;  %v1855_v63 = vpop.permute.xlu0 %1854  ;;  %vm1958_vm3 = vcmask 1042434   ;;  %vm1960_vm13 = vcmask 1043459  }
 0x648   : > { %v1567_v34 = vsel %vm1565_vm6, %v2585_v7, %v1566_v8  ;;  %vm1962_vm14 = vcmask 1044484   ;;  %vm1964_vm11 = vcmask 1045509   ;;  %vm1966_vm15 = vcmask 1046534  }
 0x649   : > { %v1571_v20 = vsel %vm1564_vm8, %v1567_v34, %v1570_v43  ;;  %2435 = vmatpush3.bf16.msra.mxu0 %v2434_v49  ;;  %vm1968_vm0 = vcmask 1047559  }
 0x64a   : > { %v1572_v51 = vsel %vm1562_vm9, nan, %v1571_v20  ;;  %2436 = vmatprep.subr.bf16.mxu0 %v3873_v30  ;;  %v1862_v3 = vpop.permute.xlu1 %1861 }
 0x64b   : > { %2362 = vmatprep.mubr.msk.f32.mxu1 %vm528_vm2, %v1572_v51 }
 0x64d   : > { %2438 = vmatpush3.bf16.msra.mxu0 %v2437_v55 }
 0x64e   : > { %2439 = vmatprep.subr.bf16.mxu0 %v3873_v30 }
 0x64f   : > { %v2589_v31 = vpop.eup %2588 }
 0x650   : > { %v2591_v23 = vpop.eup %2590  ;;  %v1672_v26 = vxor.u32 2147483648, %v2589_v31 }
 0x651   : > { %v1669_v14 = vxor.u32 2147483648, %v2591_v23  ;;  %2441 = vmatpush3.bf16.msra.mxu0 %v2440_v41 }
 0x652   : > { %v1673_v45 = vsel %vm1671_vm10, %v1672_v26, %v2591_v23 }
 0x653   : > { %v1670_v28 = vsel %vm1668_vm4, %v2589_v31, %v1669_v14 }
 0x654   : > { %v1674_v56 = vsel %vm1667_vm7, %v1670_v28, %v1673_v45 }
 0x655   : > { %v1675_v62 = vsel %vm1665_vm5, nan, %v1674_v56  ;;  %v1869_v56 = vpop.permute.xlu0 %1868 }
 0x656   : > { %2363 = vmatmul.mubr.msk.f32.gmra.mrb[8].mxu1 %vm528_vm2, %v1675_v62 }
 0x6f9   : > { %v2355_v48 = vpop.f32.mrb[2].mxu1 }
 0x6fa   : > { %v1787_v52 = vadd.f32 %v2355_v48, %v3738_v25  ;;  %v1781_v37 = vpop.f32.mrb[3].mxu1 }
 0x6fb   : > { %v1782_v61 = vadd.f32 %v3738_v25, %v1781_v37 }
 0x6fc   : > { %v1821_v1 = vmax.f32 %v1787_v52, 0.0 }
 0x6fd   : > { %v1820_v19 = vmax.f32 %v1782_v61, 0.0 }
 0x6fe   : > { %v1885_v2 = vmul.f32 %v1841_v21, %v1821_v1 }
 0x6ff   : > { %v1884_v58 = vmul.f32 %v1834_v22, %v1820_v19 }
 0x700   : > { %v1899_v0 = vsel %vm528_vm2, %v1885_v2, 0.0 }
 0x701   : > { %v1900_v10 = vrot.slane %v1899_v0, 4  ;;  %v1892_v18 = vsel %vm528_vm2, %v1884_v58, 0.0 }
 0x702   : > { %v1893_v36 = vrot.slane %v1892_v18, 4 }
 0x703   : > { %v1901_v32 = vadd.f32 %v1900_v10, %v1899_v0 }
 0x704   : > { %v1894_v44 = vadd.f32 %v1893_v36, %v1892_v18 }
 0x705   : > { %v1902_v47 = vrot.slane %v1901_v32, 2 }
 0x706   : > { %v1895_v9 = vrot.slane %v1894_v44, 2 }
 0x707   : > { %v1903_v33 = vadd.f32 %v1902_v47, %v1901_v32 }
 0x708   : > { %v1896_v57 = vadd.f32 %v1895_v9, %v1894_v44 }
 0x709   : > { %v1904_v6 = vrot.slane %v1903_v33, 1 }
 0x70a   : > { %v1897_v35 = vrot.slane %v1896_v57, 1 }
 0x70b   : > { %v1905_v53 = vadd.f32 %v1904_v6, %v1903_v33  ;;  %v1883_v6 = vpop.permute.xlu0 %1882 }
 0x70c   : > { %v1898_v17 = vadd.f32 %v1897_v35, %v1896_v57  ;;  %v2358_v15 = vpop.f32.mrb[4].mxu1 }
 0x70d   : > { %v1797_v7 = vadd.f32 %v2358_v15, %v3738_v25  ;;  %v1791_v24 = vpop.f32.mrb[5].mxu1 }
 0x70e   : > { %v1957_v16 = vsel %vm1956_vm12, %v1905_v53, %v1898_v17  ;;  %v1792_v59 = vadd.f32 %v3738_v25, %v1791_v24  ;;  %v1876_v53 = vpop.permute.xlu1 %1875 }
 0x70f   : > { %v1823_v39 = vmax.f32 %v1797_v7, 0.0 }
 0x710   : > { %v1822_v11 = vmax.f32 %v1792_v59, 0.0 }
 0x711   : > { %v1887_v8 = vmul.f32 %v1855_v63, %v1823_v39 }
 0x712   : > { %v1886_v43 = vmul.f32 %v1848_v29, %v1822_v11 }
 0x713   : > { %v1913_v34 = vsel %vm528_vm2, %v1887_v8, 0.0 }
 0x714   : > { %v1914_v13 = vrot.slane %v1913_v34, 4  ;;  %v1906_v20 = vsel %vm528_vm2, %v1886_v43, 0.0 }
 0x715   : > { %v1907_v51 = vrot.slane %v1906_v20, 4  ;;  %v2361_v27 = vpop.f32.mrb[6].mxu1 }
 0x716   : > { %v1915_v38 = vadd.f32 %v1914_v13, %v1913_v34  ;;  %v1807_v31 = vadd.f32 %v2361_v27, %v3738_v25  ;;  %v1801_v23 = vpop.f32.mrb[7].mxu1 }
 0x717   : > { %v1908_v26 = vadd.f32 %v1907_v51, %v1906_v20  ;;  %v1802_v14 = vadd.f32 %v3738_v25, %v1801_v23  ;;  %v2227_v23 = vld [vmem:[%s3819_s10] ss:$0 sm:$0xff] }
 0x718   : > { %v1916_v45 = vrot.slane %v1915_v38, 2  ;;  %v1825_v28 = vmax.f32 %v1807_v31, 0.0 }
 0x719   : > { %v1909_v62 = vrot.slane %v1908_v26, 2  ;;  %v1824_v12 = vmax.f32 %v1802_v14, 0.0 }
 0x71a   : > { %v1917_v46 = vadd.f32 %v1916_v45, %v1915_v38  ;;  %v1889_v4 = vmul.f32 %v1869_v56, %v1825_v28  ;;  %v3874_v38 = vmax.f32 %v3058_v40, 0.0 }
 0x71b   : > { %v1910_v42 = vadd.f32 %v1909_v62, %v1908_v26  ;;  %v1888_v49 = vmul.f32 %v1862_v3, %v1824_v12 }
 0x71c   : > { %v1918_v30 = vrot.slane %v1917_v46, 1  ;;  %v1927_v50 = vsel %vm528_vm2, %v1889_v4, 0.0 }
 0x71d   : > { %v1911_v54 = vrot.slane %v1910_v42, 1  ;;  %v1928_v55 = vrot.slane %v1927_v50, 4  ;;  %v1920_v60 = vsel %vm528_vm2, %v1888_v49, 0.0 }
 0x71e   : > { %v1921_v5 = vrot.slane %v1920_v60, 4  ;;  %v1919_v52 = vadd.f32 %v1918_v30, %v1917_v46 }
 0x71f   : > { %v1912_v41 = vadd.f32 %v1911_v54, %v1910_v42  ;;  %v1929_v48 = vadd.f32 %v1928_v55, %v1927_v50 }
 0x720   : > { %v1922_v37 = vadd.f32 %v1921_v5, %v1920_v60 }
 0x721   : > { %v1959_v61 = vsel %vm1958_vm3, %v1912_v41, %v1957_v16  ;;  %v1930_v1 = vrot.slane %v1929_v48, 2 }
 0x722   : > { %v1923_v21 = vrot.slane %v1922_v37, 2  ;;  %v1961_v19 = vsel %vm1960_vm13, %v1919_v52, %v1959_v61 }
 0x723   : > { %v1931_v22 = vadd.f32 %v1930_v1, %v1929_v48 }
 0x724   : > { %v1924_v2 = vadd.f32 %v1923_v21, %v1922_v37 }
 0x725   : > { %v1932_v58 = vrot.slane %v1931_v22, 1 }
 0x726   : > { %v1925_v0 = vrot.slane %v1924_v2, 1 }
 0x727   : > { %v1933_v18 = vadd.f32 %v1932_v58, %v1931_v22 }
 0x728   : > { %v1926_v10 = vadd.f32 %v1925_v0, %v1924_v2 }
 0x729   : > { %v2364_v36 = vpop.f32.mrb[8].mxu1 }
 0x72a   : > { %v1963_v32 = vsel %vm1962_vm14, %v1926_v10, %v1961_v19  ;;  %v1817_v44 = vadd.f32 %v2364_v36, %v3738_v25  ;;  %v1811_v47 = vpop.f32.mrb[9].mxu1 }
 0x72b   : > { %v1812_v9 = vadd.f32 %v3738_v25, %v1811_v47  ;;  %v1965_v33 = vsel %vm1964_vm11, %v1933_v18, %v1963_v32 }
 0x72c   : > { %v1827_v57 = vmax.f32 %v1817_v44, 0.0 }
 0x72d   : > { %v1826_v35 = vmax.f32 %v1812_v9, 0.0 }
 0x72e   : > { %v1891_v17 = vmul.f32 %v1883_v6, %v1827_v57 }
 0x72f   : > { %v1890_v15 = vmul.f32 %v1876_v53, %v1826_v35 }
 0x730   : > { %v1941_v7 = vsel %vm528_vm2, %v1891_v17, 0.0 }
 0x731   : > { %v1942_v24 = vrot.slane %v1941_v7, 4  ;;  %v1934_v16 = vsel %vm528_vm2, %v1890_v15, 0.0 }
 0x732   : > { %v1935_v59 = vrot.slane %v1934_v16, 4 }
 0x733   : > { %v1943_v39 = vadd.f32 %v1942_v24, %v1941_v7 }
 0x734   : > { %v1936_v63 = vadd.f32 %v1935_v59, %v1934_v16 }
 0x735   : > { %v1944_v11 = vrot.slane %v1943_v39, 2 }
 0x736   : > { %v1937_v29 = vrot.slane %v1936_v63, 2 }
 0x737   : > { %v1945_v25 = vadd.f32 %v1944_v11, %v1943_v39 }
 0x738   : > { %v1938_v8 = vadd.f32 %v1937_v29, %v1936_v63 }
 0x739   : > { %v1946_v43 = vrot.slane %v1945_v25, 1 }
 0x73a   : > { %v1939_v34 = vrot.slane %v1938_v8, 1 }
 0x73b   : > { %v1947_v20 = vadd.f32 %v1946_v43, %v1945_v25 }
 0x73c   : > { %v1940_v13 = vadd.f32 %v1939_v34, %v1938_v8 }
 0x73e   : > { %v1967_v51 = vsel %vm1966_vm15, %v1940_v13, %v1965_v33 }
 0x73f   : > { %v1969_v27 = vsel %vm1968_vm0, %v1947_v20, %v1967_v51 }
 0x740   : > { %v1971_v31 = vmul.f32 %v1969_v27, %v3874_v38 }
 0x742   : > { %2382 = vmatmul.mubr.msk.f32.vlgmr.msra.gmra.mrb[6].mxu0 %vm528_vm2, %v1971_v31 }
 0x815   : > { %v2056_v26 = vpop.f32.mrb[6].mxu0 }
 0x816   : > { %v2057_v14 = vadd.f32 %v2227_v23, %v2056_v26  ;;  %v2383_v45 = vpop.f32.mrb[7].mxu0 }
 0x818   : > { %2060 = vst [vmem:[%s421_s11] sm:$0xff] %v2057_v14 }
 0x819   : > { %2689 = shalt.err (!%p2686_p9)
}
 0x81a   : > { %s2690_s25 = scalar_lea.hbm %s3767_s24, 128  ;;  %s2694_s16 = scalar_lea.hbm %s3875_s22, 256 }
 0x81b   : > { %p2691_p2 = scmp.ne.s32.totalorder %s3767_s24, %s2690_s25  ;;  %p2695_p5 = scmp.lt.u32.totalorder %s3767_s24, %s3875_s22 }
 0x81c   : > { %p2696_p10 = scmp.lt.u32.totalorder %s2694_s16, %s2690_s25  ;;  %p2698_p12 = scmp.lt.u32.totalorder %s2690_s25, %s3767_s24 }
 0x81d   : > { %p2692_p0 = pnand %p2691_p2, %p3876_p7 }
 0x81e   : > { %p2697_p4 = por %p2696_p10, %p2695_p5 }
 0x81f   : > { %p2693_p3 = pneg %p2692_p0 }
 0x820   : > { %p2699_p8 = por %p2698_p12, %p2697_p4 }
 0x822   : > { %p2700_p11 = pnand %p2699_p8, %p2693_p3 }
 0x824   : > { %2703 = shalt.err (!%p2700_p11)
}
 0x825   : > { %2486 = dma.vmem_to_hbm [thread:$0]  (%p3876_p7), %s3769_s23, 128, %s3767_s24, %s2062_s26  }
 0x826 PF: > { %s3877_s15 = sld [smem:[#allocation14_spill]]  ;;  %s3878_s11 = sld [smem:[#allocation12_spill]] }
 0x827   : > { %s3879_s29 = sld [smem:[#allocation17_spill]] }
 0x82c   : > { %p2508_p13 = scmp.ge.s32.totalorder %s3877_s15, 2  ;;  %s2087_s13 = sand.u32 1, %s3878_s11  }
 0x82d   : > { %p3880_p1 = scmp.ne.s32.totalorder %s3879_s29, 0  ;;  %s2088_s17 = scalar_lea.sflag [#allocation4], %s2087_s13 }
 0x82f   : > { %p2499_p6 = pnand %p2508_p13, %p3880_p1 }
 0x831   : > { %2729 = dma.done.wait (!%p2499_p6), %s2088_s17, 128  }
 0x832   : > { %2731 = vsyncadd (!%p2499_p6), %s2088_s17, 4294967168  ;;  %s3881_s20 = sld [smem:[#allocation15_spill]]  ;;  %s3882_s21 = sld [smem:[#allocation13_spill]] }
 0x833   : > { %s3883_s19 = sld [smem:[#allocation16_spill]]  ;;  %s3884_s17 = smov %s2738_s18 }
 0x838   : > { %p23_p9 = scmp.ge.s32.totalorder %s3881_s20, 4   ;;  %s3885_s18 = smov %s3882_s21 }
 0x83a   :  { %25 = sbr.rel (!%p23_p9) target bundleno = 7 (0x7), region = 112 }
 0x841   :  { %2093 = vsyncpa [#allocation3], 1 }
 0x842   :  { %2095 = vsyncpa [#allocation3 + $0x1], 1 }
 0x843   :  { %2096 = vsyncpa [#allocation6], 1 }
 0x844   :  { %2097 = vsyncpa [#allocation4], 1 }
 0x845   :  { %2099 = vsyncpa [#allocation4 + $0x1], 1 }

</bundles_post_ra>
